<compile_context>
chip_gen: v6e
topology: v6e:2x2x1
jax: 0.10.0
libtpu: 0.0.40
codegen_flags: <defaults>
</compile_context>

<pallas_src>
import functools

import jax
import jax.numpy as jnp
import numpy as np
from jax.experimental import pallas as pl
from jax.experimental.pallas import tpu as pltpu


# ------------------------------------------------------------------
# Fused Pallas kernel: multi-tap conv matmul -> InstanceNorm -> LeakyReLU
# ------------------------------------------------------------------
def _fused_conv_in_lrelu_kernel(x_ref, w_ref, g_ref, b_ref, o_ref, acc_ref,
                                *, n_taps, m, wo):
    # x_ref  : (R, K)  bf16, R = m + (n_taps - 1) * wo
    # w_ref  : (n_taps, K, Cp) bf16   (constant block across the grid)
    # g_ref, b_ref : (1, Cp) f32
    # o_ref  : (m, Cp) bf16           (Cp multiple of 128 -> lane-dense store)
    # acc_ref: (m, Cp) f32 VMEM scratch (single-buffered accumulator)
    for t in range(n_taps):                              # static unroll (2 taps)
        # Tap offsets t*wo are static Python ints; contiguous row window -> MXU.
        xs = x_ref[pl.ds(t * wo, m), :]
        p = jnp.dot(xs, w_ref[t], preferred_element_type=jnp.float32)
        if t == 0:
            acc_ref[...] = p
        else:
            acc_ref[...] += p

    acc = acc_ref[...]                 # single read feeds stats AND normalize
    inv_m = 1.0 / m
    s = jnp.sum(acc, axis=0, keepdims=True)
    s2 = jnp.sum(acc * acc, axis=0, keepdims=True)
    mean = s * inv_m
    # One-pass biased variance (matches torch InstanceNorm2d normalization);
    # fine at these scales (f32 accumulator), two-pass only if |mean| >> std.
    var = s2 * inv_m - mean * mean
    scale = g_ref[...] * jax.lax.rsqrt(var + 1e-5)       # rsqrt -> EUP
    shift = b_ref[...] - mean * scale
    y = acc * scale + shift
    y = jnp.where(y > 0, y, 0.01 * y)                    # LeakyReLU(0.01)
    o_ref[...] = y.astype(o_ref.dtype)                   # bf16 writeback


def fused_conv_in_lrelu(xflat, w_taps, gamma, beta, *, m, wo):
    """xflat: (N, R, K) bf16; w_taps: (T, K, Cp) bf16; gamma/beta: (1, Cp) f32."""
    N, R, K = xflat.shape
    T, _, Cp = w_taps.shape
    kernel = functools.partial(_fused_conv_in_lrelu_kernel, n_taps=T, m=m, wo=wo)

    # VMEM budget: bf16 input + weights double-buffered by the pipeline,
    # f32 accumulator scratch single-buffered, bf16 output double-buffered.
    need = (2 * R * K * 2) + (2 * T * K * Cp * 2) + (2 * 2 * Cp * 4) \
         + (m * Cp * 4) + (2 * m * Cp * 2)
    vmem_limit = min(max(int(need * 1.3) + (4 << 20), 32 << 20), 96 << 20)

    return pl.pallas_call(
        kernel,
        out_shape=jax.ShapeDtypeStruct((N, m, Cp), jnp.bfloat16),
        grid_spec=pltpu.PrefetchScalarGridSpec(
            num_scalar_prefetch=0,
            grid=(N,),
            in_specs=[
                pl.BlockSpec((None, R, K), lambda n: (n, 0, 0)),
                pl.BlockSpec((T, K, Cp), lambda n: (0, 0, 0)),
                pl.BlockSpec((1, Cp), lambda n: (0, 0)),
                pl.BlockSpec((1, Cp), lambda n: (0, 0)),
            ],
            out_specs=pl.BlockSpec((None, m, Cp), lambda n: (n, 0, 0)),
            scratch_shapes=[pltpu.VMEM((m, Cp), jnp.float32)],
        ),
        compiler_params=pltpu.CompilerParams(
            dimension_semantics=("parallel",),
            vmem_limit_bytes=vmem_limit,
        ),
    )(xflat, w_taps, gamma, beta)


# ------------------------------------------------------------------
# Plain-JAX layout prep (bf16 throughout, no k*k im2col blow-up)
# ------------------------------------------------------------------
def _prep_s2_input(x):
    """4x4/stride-2/pad-1 conv input -> (N, (Ho+1)*Wo, 8*C) bf16 via
    space-to-depth(2) + width-shift concat. Row taps are handled in-kernel."""
    N, H, W, C = x.shape
    Ho, Wo = H // 2, W // 2
    x = x.astype(jnp.bfloat16)                 # cast BEFORE the layout chain
    xp = jnp.pad(x, ((0, 0), (1, 1), (1, 1), (0, 0)))
    s = xp.reshape(N, Ho + 1, 2, Wo + 1, 2, C).transpose(0, 1, 3, 2, 4, 5)
    s = s.reshape(N, Ho + 1, Wo + 1, 4 * C)
    xw = jnp.concatenate([s[:, :, 0:Wo, :], s[:, :, 1:Wo + 1, :]], axis=-1)
    return xw.reshape(N, (Ho + 1) * Wo, 8 * C), Ho, Wo


def conv4x4s2_in_lrelu(x, lp):
    xflat, Ho, Wo = _prep_s2_input(x)
    K = xflat.shape[-1]
    Kp = lp["w"].shape[1]
    if Kp > K:                                 # zero-pad contraction dim (MXU fill)
        xflat = jnp.pad(xflat, ((0, 0), (0, 0), (0, Kp - K)))
    out = fused_conv_in_lrelu(xflat, lp["w"], lp["gamma"], lp["beta"],
                              m=Ho * Wo, wo=Wo)
    N = x.shape[0]
    Cp = lp["w"].shape[-1]
    return out.reshape(N, Ho, Wo, Cp)[..., :lp["cout"]]


# ------------------------------------------------------------------
# Parameters (synthetic, deterministic; mirrors DiscriminatorImg.__init__)
# ------------------------------------------------------------------
def _round_up(v, mult):
    return ((v + mult - 1) // mult) * mult


def _pad_k_target(k):
    # Pad contraction dim to a multiple of 128 for better MXU fill on v6e/v7x,
    # but skip when the relative overhead is large (early layers are HBM-bound
    # and tiny-K padding would just add bytes).
    kp = _round_up(k, 128)
    return kp if (kp - k) * 2 <= k else k


def _init_s2_block(key, cin, cout):
    w = 0.1 * jax.random.normal(key, (4, 4, cin, cout), jnp.float32)   # HWIO
    cp = _round_up(max(cout, 128), 256 if cout >= 256 else 128)
    k = 8 * cin
    kp = _pad_k_target(k)
    # 4x4 stride-2 weights -> 2 row taps over the s2d + width-shift layout:
    # w2[da, db*4C + dh*2C + dw*C + c, co] = w[2da+dh, 2db+dw, c, co]
    w2 = w.reshape(2, 2, 2, 2, cin, cout)            # [da, dh, db, dw, c, co]
    w2 = w2.transpose(0, 2, 1, 3, 4, 5)              # [da, db, dh, dw, c, co]
    w2 = w2.reshape(2, k, cout)
    w2 = jnp.pad(w2, ((0, 0), (0, kp - k), (0, cp - cout))).astype(jnp.bfloat16)
    gamma = jnp.pad(jnp.ones((cout,), jnp.float32), (0, cp - cout)).reshape(1, cp)
    beta = jnp.zeros((1, cp), jnp.float32)
    # Conv bias dropped on purpose: exactly cancelled by InstanceNorm's mean
    # subtraction, so the forward output is unchanged.
    return {"w": w2, "w_raw": w, "gamma": gamma, "beta": beta, "cout": cout}


def _init_dout_params(key, cin):
    # d_out: 3x3 / stride-1 / pad-1 conv, 1 output channel, bias=False.
    # Computed with a plain XLA conv in the forward (only 1 of 128 lanes would
    # be real in a pallas kernel; m is tiny -> launch overhead > work).
    return {"w_raw": 0.1 * jax.random.normal(key, (3, 3, cin, 1), jnp.float32)}


def init_params(key, in_ch, num_exps, en_ch, conv_dim, repeat_num):
    keys = jax.random.split(key, repeat_num + 3)
    params = {}
    params["conv0"] = _init_s2_block(keys[0], in_ch + num_exps, conv_dim)
    curr = conv_dim
    params["conv1"] = _init_s2_block(keys[1], curr, curr * 2)
    curr = curr * 2
    main = []
    for i in range(repeat_num):
        out_dim = curr * 2
        if i == 0:
            curr = curr + en_ch
        main.append(_init_s2_block(keys[2 + i], curr, out_dim))
        curr = out_dim
    params["main"] = main
    params["d_out"] = _init_dout_params(keys[-1], curr)
    return params


# ------------------------------------------------------------------
# Forward pass (semantics of DiscriminatorImg.forward)
# ------------------------------------------------------------------
def discriminator_img_forward(params, x, z, y):
    # x: (N, 3, H, W), z: (N, en_ch, H/4, W/4), y: (N, num_exps)   [NCHW, torch]
    x = jnp.transpose(x, (0, 2, 3, 1))                 # NHWC (TPU-native)
    z = jnp.transpose(z, (0, 2, 3, 1))
    N, H, W, _ = x.shape
    lab = jnp.broadcast_to(y[:, None, None, :], (N, H, W, y.shape[-1])).astype(x.dtype)
    out = jnp.concatenate([x, lab], axis=-1)           # concat_label(x, y)
    out = conv4x4s2_in_lrelu(out, params["conv0"])     # conv0 (prep casts to bf16)
    out = conv4x4s2_in_lrelu(out, params["conv1"])     # conv1
    out = jnp.concatenate([out, z.astype(out.dtype)], axis=-1)  # cat([out, z], 1)
    for lp in params["main"]:                          # main
        out = conv4x4s2_in_lrelu(out, lp)
    out = jax.lax.conv_general_dilated(                # d_out (no bias, no norm)
        out.astype(jnp.float32), params["d_out"]["w_raw"],
        (1, 1), [(1, 1), (1, 1)],
        dimension_numbers=("NHWC", "HWIO", "NHWC"))
    out = jnp.transpose(out, (0, 3, 1, 2))             # back to NCHW (N,1,h,w)
    return jnp.squeeze(out)                            # matches torch .squeeze()


# ------------------------------------------------------------------
# Pure-JAX f32 reference (for correctness check only)
# ------------------------------------------------------------------
def _ref_forward(params, x, z, y):
    def conv(v, w, stride, pad):
        return jax.lax.conv_general_dilated(
            v, w, (stride, stride), [(pad, pad), (pad, pad)],
            dimension_numbers=("NHWC", "HWIO", "NHWC"))

    def in_lrelu(v):
        mean = v.mean(axis=(1, 2), keepdims=True)
        var = ((v - mean) ** 2).mean(axis=(1, 2), keepdims=True)
        v = (v - mean) * jax.lax.rsqrt(var + 1e-5)     # gamma=1, beta=0 (init)
        return jnp.where(v > 0, v, 0.01 * v)

    x = jnp.transpose(x, (0, 2, 3, 1))
    z = jnp.transpose(z, (0, 2, 3, 1))
    N, H, W, _ = x.shape
    lab = jnp.broadcast_to(y[:, None, None, :], (N, H, W, y.shape[-1])).astype(x.dtype)
    out = jnp.concatenate([x, lab], axis=-1)
    out = in_lrelu(conv(out, params["conv0"]["w_raw"], 2, 1))
    out = in_lrelu(conv(out, params["conv1"]["w_raw"], 2, 1))
    out = jnp.concatenate([out, z], axis=-1)
    for lp in params["main"]:
        out = in_lrelu(conv(out, lp["w_raw"], 2, 1))
    out = conv(out, params["d_out"]["w_raw"], 1, 1)
    return jnp.squeeze(jnp.transpose(out, (0, 3, 1, 2)))


# ------------------------------------------------------------------
if __name__ == "__main__":
    # Small config consistent with the module structure:
    # in_ch=3, num_exps=6, en_ch=8, conv_dim=8, repeat_num=2, image_size=32
    IN_CH, NUM_EXPS, EN_CH, CONV_DIM, REPEAT, IMG, BATCH = 3, 6, 8, 8, 2, 32, 2

    key = jax.random.PRNGKey(0)
    kp, kx, kz, ky = jax.random.split(key, 4)
    params = init_params(kp, IN_CH, NUM_EXPS, EN_CH, CONV_DIM, REPEAT)

    x = jax.random.normal(kx, (BATCH, IN_CH, IMG, IMG), jnp.float32)
    z = jax.random.normal(kz, (BATCH, EN_CH, IMG // 4, IMG // 4), jnp.float32)
    y = jax.random.normal(ky, (BATCH, NUM_EXPS), jnp.float32)

    fwd = jax.jit(lambda xx, zz, yy: discriminator_img_forward(params, xx, zz, yy))
    out = jax.block_until_ready(fwd(x, z, y))

    side = IMG // (2 ** (2 + REPEAT))
    assert out.shape == (BATCH, side, side), out.shape
    assert bool(jnp.all(jnp.isfinite(out)))

    # Correctness vs. pure-JAX f32 reference (loose tol: bf16 MXU operands and
    # bf16 inter-layer activations).
    ref = jax.block_until_ready(_ref_forward(params, x, z, y))
    np.testing.assert_allclose(np.asarray(out), np.asarray(ref), rtol=5e-2, atol=1.5e-1)

    print("KERNEL_OK")
</pallas_src>

<mosaic_0001>
module attributes {stable_mosaic.version = 11 : i64} {
  func.func @_fused_conv_in_lrelu_kernel(%arg0: i32, %arg1: memref<1x272x72xbf16, #tpu.memory_space<vmem>>, %arg2: memref<2x72x128xbf16, #tpu.memory_space<vmem>>, %arg3: memref<1x128xf32, #tpu.memory_space<vmem>>, %arg4: memref<1x128xf32, #tpu.memory_space<vmem>>, %arg5: memref<1x256x128xbf16, #tpu.memory_space<vmem>>, %arg6: memref<256x128xf32, #tpu.memory_space<vmem>>) attributes {dimension_semantics = [#tpu.dimension_semantics<parallel>], iteration_bounds = array<i64: 2>, scalar_prefetch = 0 : i64, scratch_operands = 1 : i64, tpu.core_type = #tpu.core_type<tc>, window_params = [{transform_indices = @transform_0, window_bounds = array<i64: 1, 272, 72>}, {pipeline_mode = #tpu.pipeline_mode<synchronous>, transform_indices = @transform_1, window_bounds = array<i64: 2, 72, 128>}, {pipeline_mode = #tpu.pipeline_mode<synchronous>, transform_indices = @transform_2, window_bounds = array<i64: 1, 128>}, {pipeline_mode = #tpu.pipeline_mode<synchronous>, transform_indices = @transform_3, window_bounds = array<i64: 1, 128>}, {transform_indices = @transform_4, window_bounds = array<i64: 1, 256, 128>}]} {
    %c0 = arith.constant 0 : index
    %c0_0 = arith.constant 0 : index
    %c0_1 = arith.constant 0 : index
    %0 = vector.load %arg1[%c0, %c0_0, %c0_1] : memref<1x272x72xbf16, #tpu.memory_space<vmem>>, vector<1x256x72xbf16>
    %1 = vector.shape_cast %0 : vector<1x256x72xbf16> to vector<256x72xbf16>
    %c0_2 = arith.constant 0 : index
    %c0_3 = arith.constant 0 : index
    %c0_4 = arith.constant 0 : index
    %2 = vector.load %arg2[%c0_2, %c0_3, %c0_4] : memref<2x72x128xbf16, #tpu.memory_space<vmem>>, vector<1x72x128xbf16>
    %3 = vector.shape_cast %2 : vector<1x72x128xbf16> to vector<72x128xbf16>
    %cst = arith.constant dense<0.000000e+00> : vector<256x128xf32>
    %4 = tpu.matmul %1, %3, %cst {dimension_numbers = #tpu.dot_dimension_numbers<[1], [0], [0], [1], [0, 0, 1, 1], [], []>} : vector<256x72xbf16>, vector<72x128xbf16>, vector<256x128xf32> -> vector<256x128xf32>
    %c0_5 = arith.constant 0 : index
    %c0_6 = arith.constant 0 : index
    %5 = vector.load %arg6[%c0_5, %c0_6] : memref<256x128xf32, #tpu.memory_space<vmem>>, vector<256x128xf32>
    tpu.vector_store %arg6[%c0_5, %c0_6], %4 {strides = array<i32>} : memref<256x128xf32, #tpu.memory_space<vmem>>, vector<256x128xf32>,
    %c0_7 = arith.constant 0 : index
    %c16 = arith.constant 16 : index
    %c0_8 = arith.constant 0 : index
    %6 = vector.load %arg1[%c0_7, %c16, %c0_8] : memref<1x272x72xbf16, #tpu.memory_space<vmem>>, vector<1x256x72xbf16>
    %7 = vector.shape_cast %6 : vector<1x256x72xbf16> to vector<256x72xbf16>
    %c1 = arith.constant 1 : index
    %c0_9 = arith.constant 0 : index
    %c0_10 = arith.constant 0 : index
    %8 = vector.load %arg2[%c1, %c0_9, %c0_10] : memref<2x72x128xbf16, #tpu.memory_space<vmem>>, vector<1x72x128xbf16>
    %9 = vector.shape_cast %8 : vector<1x72x128xbf16> to vector<72x128xbf16>
    %cst_11 = arith.constant dense<0.000000e+00> : vector<256x128xf32>
    %10 = tpu.matmul %7, %9, %cst_11 {dimension_numbers = #tpu.dot_dimension_numbers<[1], [0], [0], [1], [0, 0, 1, 1], [], []>} : vector<256x72xbf16>, vector<72x128xbf16>, vector<256x128xf32> -> vector<256x128xf32>
    %c0_12 = arith.constant 0 : index
    %c0_13 = arith.constant 0 : index
    %11 = vector.load %arg6[%c0_12, %c0_13] : memref<256x128xf32, #tpu.memory_space<vmem>>, vector<256x128xf32>
    %12 = arith.addf %11, %10 : vector<256x128xf32>
    %c0_14 = arith.constant 0 : index
    %c0_15 = arith.constant 0 : index
    %13 = vector.load %arg6[%c0_14, %c0_15] : memref<256x128xf32, #tpu.memory_space<vmem>>, vector<256x128xf32>
    tpu.vector_store %arg6[%c0_14, %c0_15], %12 {strides = array<i32>} : memref<256x128xf32, #tpu.memory_space<vmem>>, vector<256x128xf32>,
    %c0_16 = arith.constant 0 : index
    %c0_17 = arith.constant 0 : index
    %14 = vector.load %arg6[%c0_16, %c0_17] : memref<256x128xf32, #tpu.memory_space<vmem>>, vector<256x128xf32>
    %cst_18 = arith.constant dense<0.000000e+00> : vector<128xf32>
    %15 = vector.multi_reduction <add>, %14, %cst_18 [0] : vector<256x128xf32> to vector<128xf32>
    %16 = vector.shape_cast %15 : vector<128xf32> to vector<1x128xf32>
    %17 = arith.mulf %14, %14 : vector<256x128xf32>
    %cst_19 = arith.constant dense<0.000000e+00> : vector<128xf32>
    %18 = vector.multi_reduction <add>, %17, %cst_19 [0] : vector<256x128xf32> to vector<128xf32>
    %19 = vector.shape_cast %18 : vector<128xf32> to vector<1x128xf32>
    %cst_20 = arith.constant 3.906250e-03 : f32
    %20 = vector.broadcast %cst_20 : f32 to vector<1x128xf32>
    %21 = arith.mulf %16, %20 : vector<1x128xf32>
    %cst_21 = arith.constant 3.906250e-03 : f32
    %22 = vector.broadcast %cst_21 : f32 to vector<1x128xf32>
    %23 = arith.mulf %19, %22 : vector<1x128xf32>
    %24 = arith.mulf %21, %21 : vector<1x128xf32>
    %25 = arith.subf %23, %24 : vector<1x128xf32>
    %c0_22 = arith.constant 0 : index
    %c0_23 = arith.constant 0 : index
    %26 = vector.load %arg3[%c0_22, %c0_23] : memref<1x128xf32, #tpu.memory_space<vmem>>, vector<1x128xf32>
    %cst_24 = arith.constant 9.99999974E-6 : f32
    %27 = vector.broadcast %cst_24 : f32 to vector<1x128xf32>
    %28 = arith.addf %25, %27 : vector<1x128xf32>
    %29 = math.rsqrt %28 : vector<1x128xf32>
    %30 = arith.mulf %26, %29 : vector<1x128xf32>
    %c0_25 = arith.constant 0 : index
    %c0_26 = arith.constant 0 : index
    %31 = vector.load %arg4[%c0_25, %c0_26] : memref<1x128xf32, #tpu.memory_space<vmem>>, vector<1x128xf32>
    %32 = arith.mulf %21, %30 : vector<1x128xf32>
    %33 = arith.subf %31, %32 : vector<1x128xf32>
    %34 = vector.broadcast %30 : vector<1x128xf32> to vector<256x128xf32>
    %35 = arith.mulf %14, %34 : vector<256x128xf32>
    %36 = vector.broadcast %33 : vector<1x128xf32> to vector<256x128xf32>
    %37 = arith.addf %35, %36 : vector<256x128xf32>
    %cst_27 = arith.constant 0.000000e+00 : f32
    %38 = vector.broadcast %cst_27 : f32 to vector<256x128xf32>
    %39 = arith.cmpf ogt, %37, %38 : vector<256x128xf32>
    %cst_28 = arith.constant 0.00999999977 : f32
    %40 = vector.broadcast %cst_28 : f32 to vector<256x128xf32>
    %41 = arith.mulf %40, %37 : vector<256x128xf32>
    %42 = arith.select %39, %37, %41 : vector<256x128xi1>, vector<256x128xf32>
    %43 = arith.truncf %42 : vector<256x128xf32> to vector<256x128xbf16>
    %c0_29 = arith.constant 0 : index
    %c0_30 = arith.constant 0 : index
    %c0_31 = arith.constant 0 : index
    %44 = vector.load %arg5[%c0_29, %c0_30, %c0_31] : memref<1x256x128xbf16, #tpu.memory_space<vmem>>, vector<1x256x128xbf16>
    %45 = vector.shape_cast %44 : vector<1x256x128xbf16> to vector<256x128xbf16>
    %46 = vector.shape_cast %43 : vector<256x128xbf16> to vector<1x256x128xbf16>
    tpu.vector_store %arg5[%c0_29, %c0_30, %c0_31], %46 {strides = array<i32>} : memref<1x256x128xbf16, #tpu.memory_space<vmem>>, vector<1x256x128xbf16>,
    return
  }
  func.func @transform_0(%arg0: i32) -> (i32, i32, i32) {
    %c0_i32 = arith.constant 0 : i32
    %c0_i32_0 = arith.constant 0 : i32
    %c0_i32_1 = arith.constant 0 : i32
    return %arg0, %c0_i32, %c0_i32_0 : i32, i32, i32
  }
  func.func @transform_1(%arg0: i32) -> (i32, i32, i32) {
    %c0_i32 = arith.constant 0 : i32
    %c0_i32_0 = arith.constant 0 : i32
    %c0_i32_1 = arith.constant 0 : i32
    %c0_i32_2 = arith.constant 0 : i32
    return %c0_i32, %c0_i32_0, %c0_i32_1 : i32, i32, i32
  }
  func.func @transform_2(%arg0: i32) -> (i32, i32) {
    %c0_i32 = arith.constant 0 : i32
    %c0_i32_0 = arith.constant 0 : i32
    %c0_i32_1 = arith.constant 0 : i32
    return %c0_i32, %c0_i32_0 : i32, i32
  }
  func.func @transform_3(%arg0: i32) -> (i32, i32) {
    %c0_i32 = arith.constant 0 : i32
    %c0_i32_0 = arith.constant 0 : i32
    %c0_i32_1 = arith.constant 0 : i32
    return %c0_i32, %c0_i32_0 : i32, i32
  }
  func.func @transform_4(%arg0: i32) -> (i32, i32, i32) {
    %c0_i32 = arith.constant 0 : i32
    %c0_i32_0 = arith.constant 0 : i32
    %c0_i32_1 = arith.constant 0 : i32
    return %arg0, %c0_i32, %c0_i32_0 : i32, i32, i32
  }
}

module attributes {stable_mosaic.version = 11 : i64} {
  func.func @_fused_conv_in_lrelu_kernel(%arg0: i32, %arg1: memref<1x72x64xbf16, #tpu.memory_space<vmem>>, %arg2: memref<2x64x128xbf16, #tpu.memory_space<vmem>>, %arg3: memref<1x128xf32, #tpu.memory_space<vmem>>, %arg4: memref<1x128xf32, #tpu.memory_space<vmem>>, %arg5: memref<1x64x128xbf16, #tpu.memory_space<vmem>>, %arg6: memref<64x128xf32, #tpu.memory_space<vmem>>) attributes {dimension_semantics = [#tpu.dimension_semantics<parallel>], iteration_bounds = array<i64: 2>, scalar_prefetch = 0 : i64, scratch_operands = 1 : i64, tpu.core_type = #tpu.core_type<tc>, window_params = [{transform_indices = @transform_0, window_bounds = array<i64: 1, 72, 64>}, {pipeline_mode = #tpu.pipeline_mode<synchronous>, transform_indices = @transform_1, window_bounds = array<i64: 2, 64, 128>}, {pipeline_mode = #tpu.pipeline_mode<synchronous>, transform_indices = @transform_2, window_bounds = array<i64: 1, 128>}, {pipeline_mode = #tpu.pipeline_mode<synchronous>, transform_indices = @transform_3, window_bounds = array<i64: 1, 128>}, {transform_indices = @transform_4, window_bounds = array<i64: 1, 64, 128>}]} {
    %c0 = arith.constant 0 : index
    %c0_0 = arith.constant 0 : index
    %c0_1 = arith.constant 0 : index
    %0 = vector.load %arg1[%c0, %c0_0, %c0_1] : memref<1x72x64xbf16, #tpu.memory_space<vmem>>, vector<1x64x64xbf16>
    %1 = vector.shape_cast %0 : vector<1x64x64xbf16> to vector<64x64xbf16>
    %c0_2 = arith.constant 0 : index
    %c0_3 = arith.constant 0 : index
    %c0_4 = arith.constant 0 : index
    %2 = vector.load %arg2[%c0_2, %c0_3, %c0_4] : memref<2x64x128xbf16, #tpu.memory_space<vmem>>, vector<1x64x128xbf16>
    %3 = vector.shape_cast %2 : vector<1x64x128xbf16> to vector<64x128xbf16>
    %cst = arith.constant dense<0.000000e+00> : vector<64x128xf32>
    %4 = tpu.matmul %1, %3, %cst {dimension_numbers = #tpu.dot_dimension_numbers<[1], [0], [0], [1], [0, 0, 1, 1], [], []>} : vector<64x64xbf16>, vector<64x128xbf16>, vector<64x128xf32> -> vector<64x128xf32>
    %c0_5 = arith.constant 0 : index
    %c0_6 = arith.constant 0 : index
    %5 = vector.load %arg6[%c0_5, %c0_6] : memref<64x128xf32, #tpu.memory_space<vmem>>, vector<64x128xf32>
    tpu.vector_store %arg6[%c0_5, %c0_6], %4 {strides = array<i32>} : memref<64x128xf32, #tpu.memory_space<vmem>>, vector<64x128xf32>,
    %c0_7 = arith.constant 0 : index
    %c8 = arith.constant 8 : index
    %c0_8 = arith.constant 0 : index
    %6 = vector.load %arg1[%c0_7, %c8, %c0_8] : memref<1x72x64xbf16, #tpu.memory_space<vmem>>, vector<1x64x64xbf16>
    %7 = vector.shape_cast %6 : vector<1x64x64xbf16> to vector<64x64xbf16>
    %c1 = arith.constant 1 : index
    %c0_9 = arith.constant 0 : index
    %c0_10 = arith.constant 0 : index
    %8 = vector.load %arg2[%c1, %c0_9, %c0_10] : memref<2x64x128xbf16, #tpu.memory_space<vmem>>, vector<1x64x128xbf16>
    %9 = vector.shape_cast %8 : vector<1x64x128xbf16> to vector<64x128xbf16>
    %cst_11 = arith.constant dense<0.000000e+00> : vector<64x128xf32>
    %10 = tpu.matmul %7, %9, %cst_11 {dimension_numbers = #tpu.dot_dimension_numbers<[1], [0], [0], [1], [0, 0, 1, 1], [], []>} : vector<64x64xbf16>, vector<64x128xbf16>, vector<64x128xf32> -> vector<64x128xf32>
    %c0_12 = arith.constant 0 : index
    %c0_13 = arith.constant 0 : index
    %11 = vector.load %arg6[%c0_12, %c0_13] : memref<64x128xf32, #tpu.memory_space<vmem>>, vector<64x128xf32>
    %12 = arith.addf %11, %10 : vector<64x128xf32>
    %c0_14 = arith.constant 0 : index
    %c0_15 = arith.constant 0 : index
    %13 = vector.load %arg6[%c0_14, %c0_15] : memref<64x128xf32, #tpu.memory_space<vmem>>, vector<64x128xf32>
    tpu.vector_store %arg6[%c0_14, %c0_15], %12 {strides = array<i32>} : memref<64x128xf32, #tpu.memory_space<vmem>>, vector<64x128xf32>,
    %c0_16 = arith.constant 0 : index
    %c0_17 = arith.constant 0 : index
    %14 = vector.load %arg6[%c0_16, %c0_17] : memref<64x128xf32, #tpu.memory_space<vmem>>, vector<64x128xf32>
    %cst_18 = arith.constant dense<0.000000e+00> : vector<128xf32>
    %15 = vector.multi_reduction <add>, %14, %cst_18 [0] : vector<64x128xf32> to vector<128xf32>
    %16 = vector.shape_cast %15 : vector<128xf32> to vector<1x128xf32>
    %17 = arith.mulf %14, %14 : vector<64x128xf32>
    %cst_19 = arith.constant dense<0.000000e+00> : vector<128xf32>
    %18 = vector.multi_reduction <add>, %17, %cst_19 [0] : vector<64x128xf32> to vector<128xf32>
    %19 = vector.shape_cast %18 : vector<128xf32> to vector<1x128xf32>
    %cst_20 = arith.constant 1.562500e-02 : f32
    %20 = vector.broadcast %cst_20 : f32 to vector<1x128xf32>
    %21 = arith.mulf %16, %20 : vector<1x128xf32>
    %cst_21 = arith.constant 1.562500e-02 : f32
    %22 = vector.broadcast %cst_21 : f32 to vector<1x128xf32>
    %23 = arith.mulf %19, %22 : vector<1x128xf32>
    %24 = arith.mulf %21, %21 : vector<1x128xf32>
    %25 = arith.subf %23, %24 : vector<1x128xf32>
    %c0_22 = arith.constant 0 : index
    %c0_23 = arith.constant 0 : index
    %26 = vector.load %arg3[%c0_22, %c0_23] : memref<1x128xf32, #tpu.memory_space<vmem>>, vector<1x128xf32>
    %cst_24 = arith.constant 9.99999974E-6 : f32
    %27 = vector.broadcast %cst_24 : f32 to vector<1x128xf32>
    %28 = arith.addf %25, %27 : vector<1x128xf32>
    %29 = math.rsqrt %28 : vector<1x128xf32>
    %30 = arith.mulf %26, %29 : vector<1x128xf32>
    %c0_25 = arith.constant 0 : index
    %c0_26 = arith.constant 0 : index
    %31 = vector.load %arg4[%c0_25, %c0_26] : memref<1x128xf32, #tpu.memory_space<vmem>>, vector<1x128xf32>
    %32 = arith.mulf %21, %30 : vector<1x128xf32>
    %33 = arith.subf %31, %32 : vector<1x128xf32>
    %34 = vector.broadcast %30 : vector<1x128xf32> to vector<64x128xf32>
    %35 = arith.mulf %14, %34 : vector<64x128xf32>
    %36 = vector.broadcast %33 : vector<1x128xf32> to vector<64x128xf32>
    %37 = arith.addf %35, %36 : vector<64x128xf32>
    %cst_27 = arith.constant 0.000000e+00 : f32
    %38 = vector.broadcast %cst_27 : f32 to vector<64x128xf32>
    %39 = arith.cmpf ogt, %37, %38 : vector<64x128xf32>
    %cst_28 = arith.constant 0.00999999977 : f32
    %40 = vector.broadcast %cst_28 : f32 to vector<64x128xf32>
    %41 = arith.mulf %40, %37 : vector<64x128xf32>
    %42 = arith.select %39, %37, %41 : vector<64x128xi1>, vector<64x128xf32>
    %43 = arith.truncf %42 : vector<64x128xf32> to vector<64x128xbf16>
    %c0_29 = arith.constant 0 : index
    %c0_30 = arith.constant 0 : index
    %c0_31 = arith.constant 0 : index
    %44 = vector.load %arg5[%c0_29, %c0_30, %c0_31] : memref<1x64x128xbf16, #tpu.memory_space<vmem>>, vector<1x64x128xbf16>
    %45 = vector.shape_cast %44 : vector<1x64x128xbf16> to vector<64x128xbf16>
    %46 = vector.shape_cast %43 : vector<64x128xbf16> to vector<1x64x128xbf16>
    tpu.vector_store %arg5[%c0_29, %c0_30, %c0_31], %46 {strides = array<i32>} : memref<1x64x128xbf16, #tpu.memory_space<vmem>>, vector<1x64x128xbf16>,
    return
  }
  func.func @transform_0(%arg0: i32) -> (i32, i32, i32) {
    %c0_i32 = arith.constant 0 : i32
    %c0_i32_0 = arith.constant 0 : i32
    %c0_i32_1 = arith.constant 0 : i32
    return %arg0, %c0_i32, %c0_i32_0 : i32, i32, i32
  }
  func.func @transform_1(%arg0: i32) -> (i32, i32, i32) {
    %c0_i32 = arith.constant 0 : i32
    %c0_i32_0 = arith.constant 0 : i32
    %c0_i32_1 = arith.constant 0 : i32
    %c0_i32_2 = arith.constant 0 : i32
    return %c0_i32, %c0_i32_0, %c0_i32_1 : i32, i32, i32
  }
  func.func @transform_2(%arg0: i32) -> (i32, i32) {
    %c0_i32 = arith.constant 0 : i32
    %c0_i32_0 = arith.constant 0 : i32
    %c0_i32_1 = arith.constant 0 : i32
    return %c0_i32, %c0_i32_0 : i32, i32
  }
  func.func @transform_3(%arg0: i32) -> (i32, i32) {
    %c0_i32 = arith.constant 0 : i32
    %c0_i32_0 = arith.constant 0 : i32
    %c0_i32_1 = arith.constant 0 : i32
    return %c0_i32, %c0_i32_0 : i32, i32
  }
  func.func @transform_4(%arg0: i32) -> (i32, i32, i32) {
    %c0_i32 = arith.constant 0 : i32
    %c0_i32_0 = arith.constant 0 : i32
    %c0_i32_1 = arith.constant 0 : i32
    return %arg0, %c0_i32, %c0_i32_0 : i32, i32, i32
  }
}

module attributes {stable_mosaic.version = 11 : i64} {
  func.func @_fused_conv_in_lrelu_kernel(%arg0: i32, %arg1: memref<1x20x256xbf16, #tpu.memory_space<vmem>>, %arg2: memref<2x256x128xbf16, #tpu.memory_space<vmem>>, %arg3: memref<1x128xf32, #tpu.memory_space<vmem>>, %arg4: memref<1x128xf32, #tpu.memory_space<vmem>>, %arg5: memref<1x16x128xbf16, #tpu.memory_space<vmem>>, %arg6: memref<16x128xf32, #tpu.memory_space<vmem>>) attributes {dimension_semantics = [#tpu.dimension_semantics<parallel>], iteration_bounds = array<i64: 2>, scalar_prefetch = 0 : i64, scratch_operands = 1 : i64, tpu.core_type = #tpu.core_type<tc>, window_params = [{transform_indices = @transform_0, window_bounds = array<i64: 1, 20, 256>}, {pipeline_mode = #tpu.pipeline_mode<synchronous>, transform_indices = @transform_1, window_bounds = array<i64: 2, 256, 128>}, {pipeline_mode = #tpu.pipeline_mode<synchronous>, transform_indices = @transform_2, window_bounds = array<i64: 1, 128>}, {pipeline_mode = #tpu.pipeline_mode<synchronous>, transform_indices = @transform_3, window_bounds = array<i64: 1, 128>}, {transform_indices = @transform_4, window_bounds = array<i64: 1, 16, 128>}]} {
    %c0 = arith.constant 0 : index
    %c0_0 = arith.constant 0 : index
    %c0_1 = arith.constant 0 : index
    %0 = vector.load %arg1[%c0, %c0_0, %c0_1] : memref<1x20x256xbf16, #tpu.memory_space<vmem>>, vector<1x16x256xbf16>
    %1 = vector.shape_cast %0 : vector<1x16x256xbf16> to vector<16x256xbf16>
    %c0_2 = arith.constant 0 : index
    %c0_3 = arith.constant 0 : index
    %c0_4 = arith.constant 0 : index
    %2 = vector.load %arg2[%c0_2, %c0_3, %c0_4] : memref<2x256x128xbf16, #tpu.memory_space<vmem>>, vector<1x256x128xbf16>
    %3 = vector.shape_cast %2 : vector<1x256x128xbf16> to vector<256x128xbf16>
    %cst = arith.constant dense<0.000000e+00> : vector<16x128xf32>
    %4 = tpu.matmul %1, %3, %cst {dimension_numbers = #tpu.dot_dimension_numbers<[1], [0], [0], [1], [0, 0, 1, 1], [], []>} : vector<16x256xbf16>, vector<256x128xbf16>, vector<16x128xf32> -> vector<16x128xf32>
    %c0_5 = arith.constant 0 : index
    %c0_6 = arith.constant 0 : index
    %5 = vector.load %arg6[%c0_5, %c0_6] : memref<16x128xf32, #tpu.memory_space<vmem>>, vector<16x128xf32>
    tpu.vector_store %arg6[%c0_5, %c0_6], %4 {strides = array<i32>} : memref<16x128xf32, #tpu.memory_space<vmem>>, vector<16x128xf32>,
    %c0_7 = arith.constant 0 : index
    %c4 = arith.constant 4 : index
    %c0_8 = arith.constant 0 : index
    %6 = vector.load %arg1[%c0_7, %c4, %c0_8] : memref<1x20x256xbf16, #tpu.memory_space<vmem>>, vector<1x16x256xbf16>
    %7 = vector.shape_cast %6 : vector<1x16x256xbf16> to vector<16x256xbf16>
    %c1 = arith.constant 1 : index
    %c0_9 = arith.constant 0 : index
    %c0_10 = arith.constant 0 : index
    %8 = vector.load %arg2[%c1, %c0_9, %c0_10] : memref<2x256x128xbf16, #tpu.memory_space<vmem>>, vector<1x256x128xbf16>
    %9 = vector.shape_cast %8 : vector<1x256x128xbf16> to vector<256x128xbf16>
    %cst_11 = arith.constant dense<0.000000e+00> : vector<16x128xf32>
    %10 = tpu.matmul %7, %9, %cst_11 {dimension_numbers = #tpu.dot_dimension_numbers<[1], [0], [0], [1], [0, 0, 1, 1], [], []>} : vector<16x256xbf16>, vector<256x128xbf16>, vector<16x128xf32> -> vector<16x128xf32>
    %c0_12 = arith.constant 0 : index
    %c0_13 = arith.constant 0 : index
    %11 = vector.load %arg6[%c0_12, %c0_13] : memref<16x128xf32, #tpu.memory_space<vmem>>, vector<16x128xf32>
    %12 = arith.addf %11, %10 : vector<16x128xf32>
    %c0_14 = arith.constant 0 : index
    %c0_15 = arith.constant 0 : index
    %13 = vector.load %arg6[%c0_14, %c0_15] : memref<16x128xf32, #tpu.memory_space<vmem>>, vector<16x128xf32>
    tpu.vector_store %arg6[%c0_14, %c0_15], %12 {strides = array<i32>} : memref<16x128xf32, #tpu.memory_space<vmem>>, vector<16x128xf32>,
    %c0_16 = arith.constant 0 : index
    %c0_17 = arith.constant 0 : index
    %14 = vector.load %arg6[%c0_16, %c0_17] : memref<16x128xf32, #tpu.memory_space<vmem>>, vector<16x128xf32>
    %cst_18 = arith.constant dense<0.000000e+00> : vector<128xf32>
    %15 = vector.multi_reduction <add>, %14, %cst_18 [0] : vector<16x128xf32> to vector<128xf32>
    %16 = vector.shape_cast %15 : vector<128xf32> to vector<1x128xf32>
    %17 = arith.mulf %14, %14 : vector<16x128xf32>
    %cst_19 = arith.constant dense<0.000000e+00> : vector<128xf32>
    %18 = vector.multi_reduction <add>, %17, %cst_19 [0] : vector<16x128xf32> to vector<128xf32>
    %19 = vector.shape_cast %18 : vector<128xf32> to vector<1x128xf32>
    %cst_20 = arith.constant 6.250000e-02 : f32
    %20 = vector.broadcast %cst_20 : f32 to vector<1x128xf32>
    %21 = arith.mulf %16, %20 : vector<1x128xf32>
    %cst_21 = arith.constant 6.250000e-02 : f32
    %22 = vector.broadcast %cst_21 : f32 to vector<1x128xf32>
    %23 = arith.mulf %19, %22 : vector<1x128xf32>
    %24 = arith.mulf %21, %21 : vector<1x128xf32>
    %25 = arith.subf %23, %24 : vector<1x128xf32>
    %c0_22 = arith.constant 0 : index
    %c0_23 = arith.constant 0 : index
    %26 = vector.load %arg3[%c0_22, %c0_23] : memref<1x128xf32, #tpu.memory_space<vmem>>, vector<1x128xf32>
    %cst_24 = arith.constant 9.99999974E-6 : f32
    %27 = vector.broadcast %cst_24 : f32 to vector<1x128xf32>
    %28 = arith.addf %25, %27 : vector<1x128xf32>
    %29 = math.rsqrt %28 : vector<1x128xf32>
    %30 = arith.mulf %26, %29 : vector<1x128xf32>
    %c0_25 = arith.constant 0 : index
    %c0_26 = arith.constant 0 : index
    %31 = vector.load %arg4[%c0_25, %c0_26] : memref<1x128xf32, #tpu.memory_space<vmem>>, vector<1x128xf32>
    %32 = arith.mulf %21, %30 : vector<1x128xf32>
    %33 = arith.subf %31, %32 : vector<1x128xf32>
    %34 = vector.broadcast %30 : vector<1x128xf32> to vector<16x128xf32>
    %35 = arith.mulf %14, %34 : vector<16x128xf32>
    %36 = vector.broadcast %33 : vector<1x128xf32> to vector<16x128xf32>
    %37 = arith.addf %35, %36 : vector<16x128xf32>
    %cst_27 = arith.constant 0.000000e+00 : f32
    %38 = vector.broadcast %cst_27 : f32 to vector<16x128xf32>
    %39 = arith.cmpf ogt, %37, %38 : vector<16x128xf32>
    %cst_28 = arith.constant 0.00999999977 : f32
    %40 = vector.broadcast %cst_28 : f32 to vector<16x128xf32>
    %41 = arith.mulf %40, %37 : vector<16x128xf32>
    %42 = arith.select %39, %37, %41 : vector<16x128xi1>, vector<16x128xf32>
    %43 = arith.truncf %42 : vector<16x128xf32> to vector<16x128xbf16>
    %c0_29 = arith.constant 0 : index
    %c0_30 = arith.constant 0 : index
    %c0_31 = arith.constant 0 : index
    %44 = vector.load %arg5[%c0_29, %c0_30, %c0_31] : memref<1x16x128xbf16, #tpu.memory_space<vmem>>, vector<1x16x128xbf16>
    %45 = vector.shape_cast %44 : vector<1x16x128xbf16> to vector<16x128xbf16>
    %46 = vector.shape_cast %43 : vector<16x128xbf16> to vector<1x16x128xbf16>
    tpu.vector_store %arg5[%c0_29, %c0_30, %c0_31], %46 {strides = array<i32>} : memref<1x16x128xbf16, #tpu.memory_space<vmem>>, vector<1x16x128xbf16>,
    return
  }
  func.func @transform_0(%arg0: i32) -> (i32, i32, i32) {
    %c0_i32 = arith.constant 0 : i32
    %c0_i32_0 = arith.constant 0 : i32
    %c0_i32_1 = arith.constant 0 : i32
    return %arg0, %c0_i32, %c0_i32_0 : i32, i32, i32
  }
  func.func @transform_1(%arg0: i32) -> (i32, i32, i32) {
    %c0_i32 = arith.constant 0 : i32
    %c0_i32_0 = arith.constant 0 : i32
    %c0_i32_1 = arith.constant 0 : i32
    %c0_i32_2 = arith.constant 0 : i32
    return %c0_i32, %c0_i32_0, %c0_i32_1 : i32, i32, i32
  }
  func.func @transform_2(%arg0: i32) -> (i32, i32) {
    %c0_i32 = arith.constant 0 : i32
    %c0_i32_0 = arith.constant 0 : i32
    %c0_i32_1 = arith.constant 0 : i32
    return %c0_i32, %c0_i32_0 : i32, i32
  }
  func.func @transform_3(%arg0: i32) -> (i32, i32) {
    %c0_i32 = arith.constant 0 : i32
    %c0_i32_0 = arith.constant 0 : i32
    %c0_i32_1 = arith.constant 0 : i32
    return %c0_i32, %c0_i32_0 : i32, i32
  }
  func.func @transform_4(%arg0: i32) -> (i32, i32, i32) {
    %c0_i32 = arith.constant 0 : i32
    %c0_i32_0 = arith.constant 0 : i32
    %c0_i32_1 = arith.constant 0 : i32
    return %arg0, %c0_i32, %c0_i32_0 : i32, i32, i32
  }
}

module attributes {stable_mosaic.version = 11 : i64} {
  func.func @_fused_conv_in_lrelu_kernel(%arg0: i32, %arg1: memref<1x6x256xbf16, #tpu.memory_space<vmem>>, %arg2: memref<2x256x128xbf16, #tpu.memory_space<vmem>>, %arg3: memref<1x128xf32, #tpu.memory_space<vmem>>, %arg4: memref<1x128xf32, #tpu.memory_space<vmem>>, %arg5: memref<1x4x128xbf16, #tpu.memory_space<vmem>>, %arg6: memref<4x128xf32, #tpu.memory_space<vmem>>) attributes {dimension_semantics = [#tpu.dimension_semantics<parallel>], iteration_bounds = array<i64: 2>, scalar_prefetch = 0 : i64, scratch_operands = 1 : i64, tpu.core_type = #tpu.core_type<tc>, window_params = [{transform_indices = @transform_0, window_bounds = array<i64: 1, 6, 256>}, {pipeline_mode = #tpu.pipeline_mode<synchronous>, transform_indices = @transform_1, window_bounds = array<i64: 2, 256, 128>}, {pipeline_mode = #tpu.pipeline_mode<synchronous>, transform_indices = @transform_2, window_bounds = array<i64: 1, 128>}, {pipeline_mode = #tpu.pipeline_mode<synchronous>, transform_indices = @transform_3, window_bounds = array<i64: 1, 128>}, {transform_indices = @transform_4, window_bounds = array<i64: 1, 4, 128>}]} {
    %c0 = arith.constant 0 : index
    %c0_0 = arith.constant 0 : index
    %c0_1 = arith.constant 0 : index
    %0 = vector.load %arg1[%c0, %c0_0, %c0_1] : memref<1x6x256xbf16, #tpu.memory_space<vmem>>, vector<1x4x256xbf16>
    %1 = vector.shape_cast %0 : vector<1x4x256xbf16> to vector<4x256xbf16>
    %c0_2 = arith.constant 0 : index
    %c0_3 = arith.constant 0 : index
    %c0_4 = arith.constant 0 : index
    %2 = vector.load %arg2[%c0_2, %c0_3, %c0_4] : memref<2x256x128xbf16, #tpu.memory_space<vmem>>, vector<1x256x128xbf16>
    %3 = vector.shape_cast %2 : vector<1x256x128xbf16> to vector<256x128xbf16>
    %cst = arith.constant dense<0.000000e+00> : vector<4x128xf32>
    %4 = tpu.matmul %1, %3, %cst {dimension_numbers = #tpu.dot_dimension_numbers<[1], [0], [0], [1], [0, 0, 1, 1], [], []>} : vector<4x256xbf16>, vector<256x128xbf16>, vector<4x128xf32> -> vector<4x128xf32>
    %c0_5 = arith.constant 0 : index
    %c0_6 = arith.constant 0 : index
    %5 = vector.load %arg6[%c0_5, %c0_6] : memref<4x128xf32, #tpu.memory_space<vmem>>, vector<4x128xf32>
    tpu.vector_store %arg6[%c0_5, %c0_6], %4 {strides = array<i32>} : memref<4x128xf32, #tpu.memory_space<vmem>>, vector<4x128xf32>,
    %c0_7 = arith.constant 0 : index
    %c2 = arith.constant 2 : index
    %c0_8 = arith.constant 0 : index
    %6 = vector.load %arg1[%c0_7, %c2, %c0_8] : memref<1x6x256xbf16, #tpu.memory_space<vmem>>, vector<1x4x256xbf16>
    %7 = vector.shape_cast %6 : vector<1x4x256xbf16> to vector<4x256xbf16>
    %c1 = arith.constant 1 : index
    %c0_9 = arith.constant 0 : index
    %c0_10 = arith.constant 0 : index
    %8 = vector.load %arg2[%c1, %c0_9, %c0_10] : memref<2x256x128xbf16, #tpu.memory_space<vmem>>, vector<1x256x128xbf16>
    %9 = vector.shape_cast %8 : vector<1x256x128xbf16> to vector<256x128xbf16>
    %cst_11 = arith.constant dense<0.000000e+00> : vector<4x128xf32>
    %10 = tpu.matmul %7, %9, %cst_11 {dimension_numbers = #tpu.dot_dimension_numbers<[1], [0], [0], [1], [0, 0, 1, 1], [], []>} : vector<4x256xbf16>, vector<256x128xbf16>, vector<4x128xf32> -> vector<4x128xf32>
    %c0_12 = arith.constant 0 : index
    %c0_13 = arith.constant 0 : index
    %11 = vector.load %arg6[%c0_12, %c0_13] : memref<4x128xf32, #tpu.memory_space<vmem>>, vector<4x128xf32>
    %12 = arith.addf %11, %10 : vector<4x128xf32>
    %c0_14 = arith.constant 0 : index
    %c0_15 = arith.constant 0 : index
    %13 = vector.load %arg6[%c0_14, %c0_15] : memref<4x128xf32, #tpu.memory_space<vmem>>, vector<4x128xf32>
    tpu.vector_store %arg6[%c0_14, %c0_15], %12 {strides = array<i32>} : memref<4x128xf32, #tpu.memory_space<vmem>>, vector<4x128xf32>,
    %c0_16 = arith.constant 0 : index
    %c0_17 = arith.constant 0 : index
    %14 = vector.load %arg6[%c0_16, %c0_17] : memref<4x128xf32, #tpu.memory_space<vmem>>, vector<4x128xf32>
    %cst_18 = arith.constant dense<0.000000e+00> : vector<128xf32>
    %15 = vector.multi_reduction <add>, %14, %cst_18 [0] : vector<4x128xf32> to vector<128xf32>
    %16 = vector.shape_cast %15 : vector<128xf32> to vector<1x128xf32>
    %17 = arith.mulf %14, %14 : vector<4x128xf32>
    %cst_19 = arith.constant dense<0.000000e+00> : vector<128xf32>
    %18 = vector.multi_reduction <add>, %17, %cst_19 [0] : vector<4x128xf32> to vector<128xf32>
    %19 = vector.shape_cast %18 : vector<128xf32> to vector<1x128xf32>
    %cst_20 = arith.constant 2.500000e-01 : f32
    %20 = vector.broadcast %cst_20 : f32 to vector<1x128xf32>
    %21 = arith.mulf %16, %20 : vector<1x128xf32>
    %cst_21 = arith.constant 2.500000e-01 : f32
    %22 = vector.broadcast %cst_21 : f32 to vector<1x128xf32>
    %23 = arith.mulf %19, %22 : vector<1x128xf32>
    %24 = arith.mulf %21, %21 : vector<1x128xf32>
    %25 = arith.subf %23, %24 : vector<1x128xf32>
    %c0_22 = arith.constant 0 : index
    %c0_23 = arith.constant 0 : index
    %26 = vector.load %arg3[%c0_22, %c0_23] : memref<1x128xf32, #tpu.memory_space<vmem>>, vector<1x128xf32>
    %cst_24 = arith.constant 9.99999974E-6 : f32
    %27 = vector.broadcast %cst_24 : f32 to vector<1x128xf32>
    %28 = arith.addf %25, %27 : vector<1x128xf32>
    %29 = math.rsqrt %28 : vector<1x128xf32>
    %30 = arith.mulf %26, %29 : vector<1x128xf32>
    %c0_25 = arith.constant 0 : index
    %c0_26 = arith.constant 0 : index
    %31 = vector.load %arg4[%c0_25, %c0_26] : memref<1x128xf32, #tpu.memory_space<vmem>>, vector<1x128xf32>
    %32 = arith.mulf %21, %30 : vector<1x128xf32>
    %33 = arith.subf %31, %32 : vector<1x128xf32>
    %34 = vector.broadcast %30 : vector<1x128xf32> to vector<4x128xf32>
    %35 = arith.mulf %14, %34 : vector<4x128xf32>
    %36 = vector.broadcast %33 : vector<1x128xf32> to vector<4x128xf32>
    %37 = arith.addf %35, %36 : vector<4x128xf32>
    %cst_27 = arith.constant 0.000000e+00 : f32
    %38 = vector.broadcast %cst_27 : f32 to vector<4x128xf32>
    %39 = arith.cmpf ogt, %37, %38 : vector<4x128xf32>
    %cst_28 = arith.constant 0.00999999977 : f32
    %40 = vector.broadcast %cst_28 : f32 to vector<4x128xf32>
    %41 = arith.mulf %40, %37 : vector<4x128xf32>
    %42 = arith.select %39, %37, %41 : vector<4x128xi1>, vector<4x128xf32>
    %43 = arith.truncf %42 : vector<4x128xf32> to vector<4x128xbf16>
    %c0_29 = arith.constant 0 : index
    %c0_30 = arith.constant 0 : index
    %c0_31 = arith.constant 0 : index
    %44 = vector.load %arg5[%c0_29, %c0_30, %c0_31] : memref<1x4x128xbf16, #tpu.memory_space<vmem>>, vector<1x4x128xbf16>
    %45 = vector.shape_cast %44 : vector<1x4x128xbf16> to vector<4x128xbf16>
    %46 = vector.shape_cast %43 : vector<4x128xbf16> to vector<1x4x128xbf16>
    tpu.vector_store %arg5[%c0_29, %c0_30, %c0_31], %46 {strides = array<i32>} : memref<1x4x128xbf16, #tpu.memory_space<vmem>>, vector<1x4x128xbf16>,
    return
  }
  func.func @transform_0(%arg0: i32) -> (i32, i32, i32) {
    %c0_i32 = arith.constant 0 : i32
    %c0_i32_0 = arith.constant 0 : i32
    %c0_i32_1 = arith.constant 0 : i32
    return %arg0, %c0_i32, %c0_i32_0 : i32, i32, i32
  }
  func.func @transform_1(%arg0: i32) -> (i32, i32, i32) {
    %c0_i32 = arith.constant 0 : i32
    %c0_i32_0 = arith.constant 0 : i32
    %c0_i32_1 = arith.constant 0 : i32
    %c0_i32_2 = arith.constant 0 : i32
    return %c0_i32, %c0_i32_0, %c0_i32_1 : i32, i32, i32
  }
  func.func @transform_2(%arg0: i32) -> (i32, i32) {
    %c0_i32 = arith.constant 0 : i32
    %c0_i32_0 = arith.constant 0 : i32
    %c0_i32_1 = arith.constant 0 : i32
    return %c0_i32, %c0_i32_0 : i32, i32
  }
  func.func @transform_3(%arg0: i32) -> (i32, i32) {
    %c0_i32 = arith.constant 0 : i32
    %c0_i32_0 = arith.constant 0 : i32
    %c0_i32_1 = arith.constant 0 : i32
    return %c0_i32, %c0_i32_0 : i32, i32
  }
  func.func @transform_4(%arg0: i32) -> (i32, i32, i32) {
    %c0_i32 = arith.constant 0 : i32
    %c0_i32_0 = arith.constant 0 : i32
    %c0_i32_1 = arith.constant 0 : i32
    return %arg0, %c0_i32, %c0_i32_0 : i32, i32, i32
  }
}

</mosaic_0001>

<bundles_post_ra>
// kernel: _lambda_.4
= control target key start
LH: loop header
LB: loop body
LE: loop exit
PB: predicated region body
PF: predicated region fallthrough
CT: control target
= control target key end

     0   :  { %s2053_s15 = smov 0   ;;  %s2616_s0 = inlined_call_operand.vmem [shape: bf16[2,272,72], index: 0, kind: input, shape index: {}]   ;;  %s2617_s1 = inlined_call_operand.vmem [shape: bf16[2,72,128], index: 1, kind: input, shape index: {}]   ;;  %s2618_s2 = inlined_call_operand.vmem [shape: f32[1,128], index: 2, kind: input, shape index: {}]   ;;  %s2619_s3 = inlined_call_operand.vmem [shape: f32[1,128], index: 3, kind: input, shape index: {}]   ;;  %s2620_s4 = inlined_call_operand.vmem [shape: bf16[2,256,128], index: 4, kind: output, shape index: {}]  }
   0x1 LB: > { %s1586_s16 = sadd.s32 4294967295, %s2026_s15   ;;  %p1590_p0 = scmp.ge.s32.totalorder %s2026_s15, 1  ;;  %s2026_s15 = sphi %s2053_s15, %s14_s15  }
   0x2   : > { %p162_p1 = scmp.lt.s32.totalorder %s2026_s15, 3 }
   0x4   : > { %p163_p2 = pnand %p1590_p0, %p162_p1 }
   0x5   : > { %p188_p3 = scmp.lt.s32.totalorder (!%p163_p2), %s1586_s16, 1 }
   0x6   : > { %166 = sbr.rel (%p163_p2) target bundleno = 383 (0x17f), region = 36 }
   0xb   : > { %v1976_v0 = vld [vmem:[%s2617_s1 + $0x20] ss:$0 sps:$4 sm:$0xff]   ;;  %vm396_vm0 = vcmask 1043456   ;;  %v1978_v1 = vld [vmem:[%s2617_s1 + $0x18] sm:$0xff]   ;;  %v1977_v2 = vld [vmem:[%s2617_s1 + $0x44] ss:$0 sps:$4 sm:$0xff]  }
   0xc   : > { %1965 = vmatprep.subr.msk.bf16.mxu0 %vm396_vm0, %v1976_v0  ;;  %v398_v3 = vsel %vm396_vm0, %v1976_v0, 0  ;;  %v1979_v4 = vld [vmem:[%s2617_s1 + $0x3c] sm:$0xff]   ;;  %1966 = vmatprep.subr.msk.bf16.mxu1 %vm396_vm0, %v1977_v2  ;;  %v791_v5 = vsel %vm396_vm0, %v1977_v2, 0  ;;  %v1980_v6 = vld [vmem:[%s2617_s1 + $0x10] sm:$0xff]   ;;  %s2636_s16 = smov (!%p188_p3, %s1586_s16), 1  ;;  %v1982_v8 = vld [vmem:[%s2617_s1 + $0x8] sm:$0xff]  }
   0xd   : > { %1882 = vmatpush3.bf16.msra.mxu0 %v398_v3  ;;  %1924 = vmatpush3.bf16.msra.mxu1 %v791_v5  ;;  %v1981_v7 = vld [vmem:[%s2617_s1 + $0x34] sm:$0xff]   ;;  %v1983_v9 = vld [vmem:[%s2617_s1 + $0x2c] sm:$0xff]   ;;  %s1967_s7 = smul.u32 136, %s2636_s16  ;;  %v1984_v10 = vld [vmem:[%s2617_s1] sm:$0xff]   ;;  %vm347_vm1 = vcmask 588800   ;;  %s1711_s21 = sshll.u32 %s2636_s16, 7 }
   0xe   : > { %1883 = vmatprep.subr.bf16.mxu0 %v1978_v1  ;;  %1925 = vmatprep.subr.bf16.mxu1 %v1979_v4  ;;  %v1985_v11 = vld [vmem:[%s2617_s1 + $0x24] sm:$0xff]   ;;  %s2575_s23 = scalar_lea.vmem %s2620_s4, %s1711_s21 }
   0xf   : > { %s2097_s14 = scalar_lea.vmem %s2616_s0, %s1967_s7 }
  0x10   : > { %v1986_v12 = vld [vmem:[%s2097_s14] sm:$0xff]   ;;  %v1987_v13 = vld [vmem:[%s2097_s14 + $0x8] sm:$0xff]   ;;  %v1989_v15 = vld [vmem:[%s2097_s14 + $0x10] sm:$0xff]  }
  0x11   : > { %1884 = vmatpush3.bf16.msra.mxu0 %v1978_v1  ;;  %1926 = vmatpush3.bf16.msra.mxu1 %v1979_v4  ;;  %v1988_v14 = vld [vmem:[%s2097_s14 + $0x8] sm:$0xff]   ;;  %v1990_v16 = vld [vmem:[%s2097_s14 + $0x10] sm:$0xff]   ;;  %v1991_v17 = vld [vmem:[%s2097_s14 + $0x18] sm:$0xff]  }
  0x12   : > { %1885 = vmatprep.subr.bf16.mxu0 %v1980_v6  ;;  %1927 = vmatprep.subr.bf16.mxu1 %v1981_v7  ;;  %v1992_v18 = vld [vmem:[%s2097_s14 + $0x18] sm:$0xff]   ;;  %v1993_v19 = vld [vmem:[%s2097_s14 + $0x20] sm:$0xff]   ;;  %v1995_v21 = vld [vmem:[%s2097_s14 + $0x28] sm:$0xff]  }
  0x13   : > { %1891 = vmatprep.mubr.msk.bf16.mxu0 %vm347_vm1, %v1986_v12  ;;  %1933 = vmatprep.mubr.msk.bf16.mxu1 %vm347_vm1, %v1987_v13  ;;  %v1994_v20 = vld [vmem:[%s2097_s14 + $0x20] sm:$0xff]   ;;  %v1996_v22 = vld [vmem:[%s2097_s14 + $0x28] sm:$0xff]   ;;  %v1997_v23 = vld [vmem:[%s2097_s14 + $0x30] sm:$0xff]  }
  0x14   : > { %v1998_v24 = vld [vmem:[%s2097_s14 + $0x30] sm:$0xff]   ;;  %v1999_v25 = vld [vmem:[%s2097_s14 + $0x38] sm:$0xff]   ;;  %v2001_v27 = vld [vmem:[%s2097_s14 + $0x40] sm:$0xff]  }
  0x15   : > { %1886 = vmatpush3.bf16.msra.mxu0 %v1980_v6  ;;  %1928 = vmatpush3.bf16.msra.mxu1 %v1981_v7  ;;  %v2000_v26 = vld [vmem:[%s2097_s14 + $0x38] sm:$0xff]   ;;  %v2002_v28 = vld [vmem:[%s2097_s14 + $0x40] sm:$0xff]   ;;  %v2003_v29 = vld [vmem:[%s2097_s14 + $0x48] sm:$0xff]  }
  0x16   : > { %1887 = vmatprep.subr.bf16.mxu0 %v1982_v8  ;;  %1929 = vmatprep.subr.bf16.mxu1 %v1983_v9  ;;  %v2004_v30 = vld [vmem:[%s2097_s14 + $0x48] sm:$0xff]   ;;  %v2005_v31 = vld [vmem:[%s2097_s14 + $0x50] sm:$0xff]   ;;  %v2007_v33 = vld [vmem:[%s2097_s14 + $0x58] sm:$0xff]  }
  0x17   : > { %v2006_v32 = vld [vmem:[%s2097_s14 + $0x50] sm:$0xff]   ;;  %v2008_v34 = vld [vmem:[%s2097_s14 + $0x58] sm:$0xff]   ;;  %v2009_v35 = vld [vmem:[%s2097_s14 + $0x60] sm:$0xff]  }
  0x18   : > { %v2010_v36 = vld [vmem:[%s2097_s14 + $0x60] sm:$0xff]   ;;  %v2011_v37 = vld [vmem:[%s2097_s14 + $0x68] sm:$0xff]   ;;  %v2013_v39 = vld [vmem:[%s2097_s14 + $0x70] sm:$0xff]  }
  0x19   : > { %1888 = vmatpush3.bf16.msra.mxu0 %v1982_v8  ;;  %1930 = vmatpush3.bf16.msra.mxu1 %v1983_v9  ;;  %v2012_v38 = vld [vmem:[%s2097_s14 + $0x68] sm:$0xff]   ;;  %v2014_v40 = vld [vmem:[%s2097_s14 + $0x70] sm:$0xff]   ;;  %v2015_v41 = vld [vmem:[%s2097_s14 + $0x78] sm:$0xff]  }
  0x1a   : > { %1889 = vmatprep.subr.bf16.mxu0 %v1984_v10  ;;  %1931 = vmatprep.subr.bf16.mxu1 %v1985_v11  ;;  %v2016_v42 = vld [vmem:[%s2097_s14 + $0x78] sm:$0xff]   ;;  %v2017_v43 = vld [vmem:[%s2097_s14 + $0x80] sm:$0xff]  }
  0x1d   : > { %1890 = vmatpush3.bf16.msra.mxu0 %v1984_v10  ;;  %1932 = vmatpush3.bf16.msra.mxu1 %v1985_v11 }
  0x20   : > { %1892 = vmatmul.mubr.msk.bf16.vlgmr.msra.gmra.mxu0 %vm347_vm1, %v1988_v14  ;;  %1934 = vmatmul.mubr.msk.bf16.vlgmr.msra.gmra.mxu1 %vm347_vm1, %v1989_v15 }
  0x21   : > { %1895 = vmatprep.mubr.msk.bf16.mxu0 %vm347_vm1, %v1990_v16  ;;  %1937 = vmatprep.mubr.msk.bf16.mxu1 %vm347_vm1, %v1991_v17 }
  0x28   : > { %1896 = vmatmul.mubr.msk.bf16.gmra.mxu0 %vm347_vm1, %v1992_v18  ;;  %1938 = vmatmul.mubr.msk.bf16.gmra.mxu1 %vm347_vm1, %v1993_v19 }
  0x29   : > { %1899 = vmatprep.mubr.msk.bf16.mxu0 %vm347_vm1, %v1994_v20  ;;  %1941 = vmatprep.mubr.msk.bf16.mxu1 %vm347_vm1, %v1995_v21 }
  0x30   : > { %1900 = vmatmul.mubr.msk.bf16.gmra.mxu0 %vm347_vm1, %v1996_v22  ;;  %1942 = vmatmul.mubr.msk.bf16.gmra.mxu1 %vm347_vm1, %v1997_v23 }
  0x31   : > { %1903 = vmatprep.mubr.msk.bf16.mxu0 %vm347_vm1, %v1998_v24  ;;  %1945 = vmatprep.mubr.msk.bf16.mxu1 %vm347_vm1, %v1999_v25 }
  0x38   : > { %1904 = vmatmul.mubr.msk.bf16.gmra.mxu0 %vm347_vm1, %v2000_v26  ;;  %1946 = vmatmul.mubr.msk.bf16.gmra.mxu1 %vm347_vm1, %v2001_v27 }
  0x39   : > { %1907 = vmatprep.mubr.msk.bf16.mxu0 %vm347_vm1, %v2002_v28  ;;  %1949 = vmatprep.mubr.msk.bf16.mxu1 %vm347_vm1, %v2003_v29 }
  0x40   : > { %1908 = vmatmul.mubr.msk.bf16.gmra.mxu0 %vm347_vm1, %v2004_v30  ;;  %1950 = vmatmul.mubr.msk.bf16.gmra.mxu1 %vm347_vm1, %v2005_v31 }
  0x41   : > { %1911 = vmatprep.mubr.msk.bf16.mxu0 %vm347_vm1, %v2006_v32  ;;  %1953 = vmatprep.mubr.msk.bf16.mxu1 %vm347_vm1, %v2007_v33 }
  0x48   : > { %1912 = vmatmul.mubr.msk.bf16.gmra.mxu0 %vm347_vm1, %v2008_v34  ;;  %1954 = vmatmul.mubr.msk.bf16.gmra.mxu1 %vm347_vm1, %v2009_v35 }
  0x49   : > { %1915 = vmatprep.mubr.msk.bf16.mxu0 %vm347_vm1, %v2010_v36  ;;  %1957 = vmatprep.mubr.msk.bf16.mxu1 %vm347_vm1, %v2011_v37 }
  0x50   : > { %1916 = vmatmul.mubr.msk.bf16.gmra.mxu0 %vm347_vm1, %v2012_v38  ;;  %1958 = vmatmul.mubr.msk.bf16.gmra.mxu1 %vm347_vm1, %v2013_v39 }
  0x51   : > { %1919 = vmatprep.mubr.msk.bf16.mxu0 %vm347_vm1, %v2014_v40  ;;  %1961 = vmatprep.mubr.msk.bf16.mxu1 %vm347_vm1, %v2015_v41 }
  0x58   : > { %1920 = vmatmul.mubr.msk.bf16.gmra.mxu0 %vm347_vm1, %v2016_v42  ;;  %1962 = vmatmul.mubr.msk.bf16.gmra.mxu1 %vm347_vm1, %v2017_v43 }
  0xe0   : > { %v1893_v44 = vpop.f32.mrf.mxu0  ;;  %v1935_v45 = vpop.f32.mrf.mxu1 }
  0xe1   : > { %v2165_v53 = vadd.f32 %v1935_v45, %v1893_v44 }
  0xe2   : > { %v434_v46 = vpop.f32.mrf.mxu0  ;;  %v827_v47 = vpop.f32.mrf.mxu1 }
  0xe3   : > { %v2163_v50 = vadd.f32 %v827_v47, %v434_v46  ;;  %v1121_v63 = vmul.f32 %v2165_v53, %v2165_v53 }
  0xe4   : > { %v1894_v48 = vpop.f32.mrf.mxu0  ;;  %v1936_v49 = vpop.f32.mrf.mxu1 }
  0xe5   : > { %v1119_v57 = vmul.f32 %v2163_v50, %v2163_v50  ;;  %v2171_v58 = vadd.f32 %v1936_v49, %v1894_v48 }
  0xe6   : > { %v437_v51 = vpop.f32.mrf.mxu0  ;;  %v830_v52 = vpop.f32.mrf.mxu1 }
  0xe7   : > { %v2167_v54 = vadd.f32 %v830_v52, %v437_v51  ;;  %v1122_v5 = vmul.f32 %v2171_v58, %v2171_v58 }
  0xe8   : > { %v1897_v55 = vpop.f32.mrf.mxu0  ;;  %v1939_v56 = vpop.f32.mrf.mxu1 }
  0xe9   : > { %v1082_v59 = vadd.f32 %v2167_v54, %v2163_v50  ;;  %v1120_v60 = vmul.f32 %v2167_v54, %v2167_v54  ;;  %v2185_v9 = vadd.f32 %v1939_v56, %v1897_v55 }
  0xea   : > { %v450_v61 = vpop.f32.mrf.mxu0  ;;  %v843_v62 = vpop.f32.mrf.mxu1 }
  0xeb   : > { %v1083_v0 = vadd.f32 %v1082_v59, %v2165_v53  ;;  %v1151_v1 = vadd.f32 %v1120_v60, %v1119_v57  ;;  %v2180_v2 = vadd.f32 %v843_v62, %v450_v61  ;;  %v1125_v23 = vmul.f32 %v2185_v9, %v2185_v9 }
  0xec   : > { %v1898_v3 = vpop.f32.mrf.mxu0  ;;  %v1940_v4 = vpop.f32.mrf.mxu1 }
  0xed   : > { %v1152_v6 = vadd.f32 %v1151_v1, %v1121_v63  ;;  %v1084_v7 = vadd.f32 %v1083_v0, %v2171_v58  ;;  %v1123_v12 = vmul.f32 %v2180_v2, %v2180_v2  ;;  %v2192_v18 = vadd.f32 %v1940_v4, %v1898_v3 }
  0xee   : > { %v453_v8 = vpop.f32.mrf.mxu0  ;;  %v846_v10 = vpop.f32.mrf.mxu1 }
  0xef   : > { %v1085_v11 = vadd.f32 %v1084_v7, %v2180_v2  ;;  %v1153_v13 = vadd.f32 %v1152_v6, %v1122_v5  ;;  %v2190_v14 = vadd.f32 %v846_v10, %v453_v8  ;;  %v1126_v29 = vmul.f32 %v2192_v18, %v2192_v18 }
  0xf0   : > { %v1901_v15 = vpop.f32.mrf.mxu0  ;;  %v1943_v16 = vpop.f32.mrf.mxu1 }
  0xf1   : > { %v1154_v17 = vadd.f32 %v1153_v13, %v1123_v12  ;;  %v1086_v19 = vadd.f32 %v1085_v11, %v2190_v14  ;;  %v1124_v20 = vmul.f32 %v2190_v14, %v2190_v14  ;;  %v2205_v33 = vadd.f32 %v1943_v16, %v1901_v15 }
  0xf2   : > { %v466_v21 = vpop.f32.mrf.mxu0  ;;  %v859_v22 = vpop.f32.mrf.mxu1 }
  0xf3   : > { %v1087_v24 = vadd.f32 %v1086_v19, %v2185_v9  ;;  %v1155_v25 = vadd.f32 %v1154_v17, %v1124_v20  ;;  %v2200_v26 = vadd.f32 %v859_v22, %v466_v21  ;;  %v1129_v47 = vmul.f32 %v2205_v33, %v2205_v33 }
  0xf4   : > { %v1902_v27 = vpop.f32.mrf.mxu0  ;;  %v1944_v28 = vpop.f32.mrf.mxu1 }
  0xf5   : > { %v1156_v30 = vadd.f32 %v1155_v25, %v1125_v23  ;;  %v1088_v31 = vadd.f32 %v1087_v24, %v2192_v18  ;;  %v1127_v36 = vmul.f32 %v2200_v26, %v2200_v26  ;;  %v2212_v42 = vadd.f32 %v1944_v28, %v1902_v27 }
  0xf6   : > { %v469_v32 = vpop.f32.mrf.mxu0  ;;  %v862_v34 = vpop.f32.mrf.mxu1 }
  0xf7   : > { %v1089_v35 = vadd.f32 %v1088_v31, %v2200_v26  ;;  %v1157_v37 = vadd.f32 %v1156_v30, %v1126_v29  ;;  %v2210_v38 = vadd.f32 %v862_v34, %v469_v32  ;;  %v1130_v56 = vmul.f32 %v2212_v42, %v2212_v42 }
  0xf8   : > { %v1905_v39 = vpop.f32.mrf.mxu0  ;;  %v1947_v40 = vpop.f32.mrf.mxu1 }
  0xf9   : > { %v1158_v41 = vadd.f32 %v1157_v37, %v1127_v36  ;;  %v1090_v43 = vadd.f32 %v1089_v35, %v2210_v38  ;;  %v1128_v44 = vmul.f32 %v2210_v38, %v2210_v38  ;;  %v2225_v61 = vadd.f32 %v1947_v40, %v1905_v39 }
  0xfa   : > { %v482_v45 = vpop.f32.mrf.mxu0  ;;  %v875_v46 = vpop.f32.mrf.mxu1 }
  0xfb   : > { %v1091_v48 = vadd.f32 %v1090_v43, %v2205_v33  ;;  %v1159_v49 = vadd.f32 %v1158_v41, %v1128_v44  ;;  %v2220_v51 = vadd.f32 %v875_v46, %v482_v45  ;;  %v1133_v13 = vmul.f32 %v2225_v61, %v2225_v61 }
  0xfc   : > { %v1906_v52 = vpop.f32.mrf.mxu0  ;;  %v1948_v55 = vpop.f32.mrf.mxu1 }
  0xfd   : > { %v1160_v57 = vadd.f32 %v1159_v49, %v1129_v47  ;;  %v1092_v59 = vadd.f32 %v1091_v48, %v2212_v42  ;;  %v1131_v0 = vmul.f32 %v2220_v51, %v2220_v51  ;;  %v2232_v7 = vadd.f32 %v1948_v55, %v1906_v52 }
  0xfe   : > { %v485_v60 = vpop.f32.mrf.mxu0  ;;  %v878_v62 = vpop.f32.mrf.mxu1 }
  0xff   : > { %v1093_v63 = vadd.f32 %v1092_v59, %v2220_v51  ;;  %v1161_v1 = vadd.f32 %v1160_v57, %v1130_v56  ;;  %v2230_v3 = vadd.f32 %v878_v62, %v485_v60  ;;  %v1134_v21 = vmul.f32 %v2232_v7, %v2232_v7 }
 0x100   : > { %v1909_v4 = vpop.f32.mrf.mxu0  ;;  %v1951_v5 = vpop.f32.mrf.mxu1 }
 0x101   : > { %v1162_v6 = vadd.f32 %v1161_v1, %v1131_v0  ;;  %v1094_v8 = vadd.f32 %v1093_v63, %v2230_v3  ;;  %v1132_v10 = vmul.f32 %v2230_v3, %v2230_v3  ;;  %v2245_v25 = vadd.f32 %v1951_v5, %v1909_v4 }
 0x102   : > { %v498_v11 = vpop.f32.mrf.mxu0  ;;  %v891_v12 = vpop.f32.mrf.mxu1 }
 0x103   : > { %v1095_v15 = vadd.f32 %v1094_v8, %v2225_v61  ;;  %v1163_v16 = vadd.f32 %v1162_v6, %v1132_v10  ;;  %v2240_v17 = vadd.f32 %v891_v12, %v498_v11  ;;  %v1137_v43 = vmul.f32 %v2245_v25, %v2245_v25 }
 0x104   : > { %v1910_v19 = vpop.f32.mrf.mxu0  ;;  %v1952_v20 = vpop.f32.mrf.mxu1 }
 0x105   : > { %v1164_v22 = vadd.f32 %v1163_v16, %v1133_v13  ;;  %v1096_v23 = vadd.f32 %v1095_v15, %v2232_v7  ;;  %v1135_v29 = vmul.f32 %v2240_v17, %v2240_v17  ;;  %v2252_v36 = vadd.f32 %v1952_v20, %v1910_v19 }
 0x106   : > { %v501_v24 = vpop.f32.mrf.mxu0  ;;  %v894_v27 = vpop.f32.mrf.mxu1 }
 0x107   : > { %v1097_v28 = vadd.f32 %v1096_v23, %v2240_v17  ;;  %v1165_v30 = vadd.f32 %v1164_v22, %v1134_v21  ;;  %v2250_v31 = vadd.f32 %v894_v27, %v501_v24  ;;  %v1138_v49 = vmul.f32 %v2252_v36, %v2252_v36 }
 0x108   : > { %v1913_v32 = vpop.f32.mrf.mxu0  ;;  %v1955_v34 = vpop.f32.mrf.mxu1 }
 0x109   : > { %v1166_v35 = vadd.f32 %v1165_v30, %v1135_v29  ;;  %v1098_v37 = vadd.f32 %v1097_v28, %v2250_v31  ;;  %v1136_v39 = vmul.f32 %v2250_v31, %v2250_v31  ;;  %v2265_v57 = vadd.f32 %v1955_v34, %v1913_v32 }
 0x10a   : > { %v514_v40 = vpop.f32.mrf.mxu0  ;;  %v907_v41 = vpop.f32.mrf.mxu1 }
 0x10b   : > { %v1099_v44 = vadd.f32 %v1098_v37, %v2245_v25  ;;  %v1167_v45 = vadd.f32 %v1166_v35, %v1136_v39  ;;  %v2260_v46 = vadd.f32 %v907_v41, %v514_v40  ;;  %v1141_v13 = vmul.f32 %v2265_v57, %v2265_v57 }
 0x10c   : > { %v1914_v47 = vpop.f32.mrf.mxu0  ;;  %v1956_v48 = vpop.f32.mrf.mxu1 }
 0x10d   : > { %v1168_v52 = vadd.f32 %v1167_v45, %v1137_v43  ;;  %v1100_v55 = vadd.f32 %v1099_v44, %v2252_v36  ;;  %v1139_v62 = vmul.f32 %v2260_v46, %v2260_v46  ;;  %v2272_v6 = vadd.f32 %v1956_v48, %v1914_v47 }
 0x10e   : > { %v517_v56 = vpop.f32.mrf.mxu0  ;;  %v910_v59 = vpop.f32.mrf.mxu1 }
 0x10f   : > { %v1101_v60 = vadd.f32 %v1100_v55, %v2260_v46  ;;  %v1169_v63 = vadd.f32 %v1168_v52, %v1138_v49  ;;  %v2270_v0 = vadd.f32 %v910_v59, %v517_v56  ;;  %v1142_v22 = vmul.f32 %v2272_v6, %v2272_v6 }
 0x110   : > { %v1917_v1 = vpop.f32.mrf.mxu0  ;;  %v1959_v4 = vpop.f32.mrf.mxu1 }
 0x111   : > { %v1170_v5 = vadd.f32 %v1169_v63, %v1139_v62  ;;  %v1102_v8 = vadd.f32 %v1101_v60, %v2270_v0  ;;  %v1140_v10 = vmul.f32 %v2270_v0, %v2270_v0  ;;  %v2285_v28 = vadd.f32 %v1959_v4, %v1917_v1 }
 0x112   : > { %v530_v11 = vpop.f32.mrf.mxu0  ;;  %v923_v12 = vpop.f32.mrf.mxu1 }
 0x113   : > { %v1103_v15 = vadd.f32 %v1102_v8, %v2265_v57  ;;  %v1171_v16 = vadd.f32 %v1170_v5, %v1140_v10  ;;  %v2280_v19 = vadd.f32 %v923_v12, %v530_v11  ;;  %v1145_v48 = vmul.f32 %v2285_v28, %v2285_v28 }
 0x114   : > { %v1918_v20 = vpop.f32.mrf.mxu0  ;;  %v1960_v21 = vpop.f32.mrf.mxu1 }
 0x115   : > { %v1172_v23 = vadd.f32 %v1171_v16, %v1141_v13  ;;  %v1104_v24 = vadd.f32 %v1103_v15, %v2272_v6  ;;  %v1143_v32 = vmul.f32 %v2280_v19, %v2280_v19  ;;  %v2292_v41 = vadd.f32 %v1960_v21, %v1918_v20 }
 0x116   : > { %v533_v27 = vpop.f32.mrf.mxu0  ;;  %v926_v29 = vpop.f32.mrf.mxu1 }
 0x117   : > { %v1105_v30 = vadd.f32 %v1104_v24, %v2280_v19  ;;  %v1173_v34 = vadd.f32 %v1172_v23, %v1142_v22  ;;  %v2290_v35 = vadd.f32 %v926_v29, %v533_v27  ;;  %v1146_v60 = vmul.f32 %v2292_v41, %v2292_v41 }
 0x118   : > { %v1921_v37 = vpop.f32.mrf.mxu0  ;;  %v1963_v39 = vpop.f32.mrf.mxu1 }
 0x119   : > { %v1174_v40 = vadd.f32 %v1173_v34, %v1143_v32  ;;  %v1106_v43 = vadd.f32 %v1105_v30, %v2290_v35  ;;  %v1144_v44 = vmul.f32 %v2290_v35, %v2290_v35  ;;  %v2305_v4 = vadd.f32 %v1963_v39, %v1921_v37 }
 0x11a   : > { %v546_v45 = vpop.f32.mrf.mxu0  ;;  %v939_v47 = vpop.f32.mrf.mxu1 }
 0x11b   : > { %v1107_v49 = vadd.f32 %v1106_v43, %v2285_v28  ;;  %v1175_v52 = vadd.f32 %v1174_v40, %v1144_v44  ;;  %v2300_v55 = vadd.f32 %v939_v47, %v546_v45  ;;  %v1149_v21 = vmul.f32 %v2305_v4, %v2305_v4 }
 0x11c   : > { %v1922_v56 = vpop.f32.mrf.mxu0  ;;  %v1964_v59 = vpop.f32.mrf.mxu1 }
 0x11d   : > { %v1176_v62 = vadd.f32 %v1175_v52, %v1145_v48  ;;  %v1108_v63 = vadd.f32 %v1107_v49, %v2292_v41  ;;  %v1147_v10 = vmul.f32 %v2300_v55, %v2300_v55  ;;  %v2312_v15 = vadd.f32 %v1964_v59, %v1922_v56 }
 0x11e   : > { %v549_v1 = vpop.f32.mrf.mxu0  ;;  %v942_v5 = vpop.f32.mrf.mxu1 }
 0x11f   : > { %v1109_v8 = vadd.f32 %v1108_v63, %v2300_v55  ;;  %v1177_v11 = vadd.f32 %v1176_v62, %v1146_v60  ;;  %v2310_v12 = vadd.f32 %v942_v5, %v549_v1  ;;  %v1150_v24 = vmul.f32 %v2312_v15, %v2312_v15 }
 0x120   : > { %v1200_v1 = vlaneseq }
 0x121   : > { %v1178_v13 = vadd.f32 %v1177_v11, %v1147_v10  ;;  %v1110_v16 = vadd.f32 %v1109_v8, %v2310_v12  ;;  %v1148_v20 = vmul.f32 %v2310_v12, %v2310_v12  ;;  %v1192_v10 = vld [vmem:[%s2618_s2] sm:$0x1] }
 0x122   : > { %v1201_v5 = vshrl.u32 %v1200_v1, 7 }
 0x123   : > { %v1111_v22 = vadd.f32 %v1110_v16, %v2305_v4  ;;  %v1179_v23 = vadd.f32 %v1178_v13, %v1148_v20 }
 0x124   : > { %v1202_v13 = vsub.s32 0, %v1201_v5 }
 0x125   : > { %v1112_v27 = vadd.f32 %v1111_v22, %v2312_v15  ;;  %v1180_v29 = vadd.f32 %v1179_v23, %v1149_v21  ;;  %v1196_v21 = vld [vmem:[%s2619_s3] sm:$0x1] }
 0x127   : > { %v1113_v30 = vrot.slane %v1112_v27, 4  ;;  %v1181_v32 = vadd.f32 %v1180_v29, %v1150_v24 }
 0x129   : > { %v1114_v34 = vadd.f32 %v1113_v30, %v1112_v27  ;;  %v1182_v37 = vrot.slane %v1181_v32, 4 }
 0x12b   : > { %v1115_v39 = vrot.slane %v1114_v34, 2  ;;  %v1183_v40 = vadd.f32 %v1182_v37, %v1181_v32 }
 0x12d   : > { %v1116_v43 = vadd.f32 %v1115_v39, %v1114_v34  ;;  %v1184_v44 = vrot.slane %v1183_v40, 2 }
 0x12f   : > { %v1117_v45 = vrot.slane %v1116_v43, 1  ;;  %v1185_v47 = vadd.f32 %v1184_v44, %v1183_v40 }
 0x131   : > { %v1118_v48 = vadd.f32 %v1117_v45, %v1116_v43  ;;  %v1186_v49 = vrot.slane %v1185_v47, 1 }
 0x133   : > { %v1187_v52 = vadd.f32 %v1186_v49, %v1185_v47  ;;  %v1188_v56 = vmul.f32 0.00390625, %v1118_v48 }
 0x135   : > { %v1189_v59 = vmul.f32 0.00390625, %v1187_v52  ;;  %v1190_v60 = vmul.f32 %v1188_v56, %v1188_v56 }
 0x137   : > { %v1191_v62 = vsub.f32 %v1189_v59, %v1190_v60 }
 0x139   : > { %v1193_v63 = vadd.f32 1e-05, %v1191_v62 }
 0x13b   : > { %2018 = vrsqrt.f32 %v1193_v63 }
 0x148   : > { %v2019_v8 = vpop.eup %2018 }
 0x149   : > { %v1195_v11 = vmul.f32 %v2019_v8, %v1192_v10 }
 0x14b   : > { %v1197_v16 = vmul.f32 %v1195_v11, %v1188_v56  ;;  %v1203_v20 = vrot.slane %v1195_v11, %v1202_v13 }
 0x14d   : > { %v1198_v22 = vsub.f32 %v1196_v21, %v1197_v16  ;;  %v1205_v23 = vmul.f32 %v1203_v20, %v2163_v50  ;;  %v1206_v24 = vmul.f32 %v1203_v20, %v2167_v54  ;;  %v1207_v27 = vmul.f32 %v1203_v20, %v2165_v53 }
 0x14e   : > { %v1208_v29 = vmul.f32 %v1203_v20, %v2171_v58  ;;  %v1209_v30 = vmul.f32 %v1203_v20, %v2180_v2  ;;  %v1210_v32 = vmul.f32 %v1203_v20, %v2190_v14  ;;  %v1211_v34 = vmul.f32 %v1203_v20, %v2185_v9 }
 0x14f   : > { %v1212_v37 = vmul.f32 %v1203_v20, %v2192_v18  ;;  %v1213_v39 = vmul.f32 %v1203_v20, %v2200_v26  ;;  %v1214_v40 = vmul.f32 %v1203_v20, %v2210_v38  ;;  %v1215_v50 = vmul.f32 %v1203_v20, %v2205_v33 }
 0x150   : > { %v1216_v54 = vmul.f32 %v1203_v20, %v2212_v42  ;;  %v1217_v53 = vmul.f32 %v1203_v20, %v2220_v51  ;;  %v1218_v58 = vmul.f32 %v1203_v20, %v2230_v3  ;;  %v1219_v2 = vmul.f32 %v1203_v20, %v2225_v61 }
 0x151   : > { %v1220_v14 = vmul.f32 %v1203_v20, %v2232_v7  ;;  %v1221_v9 = vmul.f32 %v1203_v20, %v2240_v17  ;;  %v1222_v18 = vmul.f32 %v1203_v20, %v2250_v31  ;;  %v1223_v26 = vmul.f32 %v1203_v20, %v2245_v25 }
 0x152   : > { %v1224_v38 = vmul.f32 %v1203_v20, %v2252_v36  ;;  %v1241_v43 = vrot.slane %v1198_v22, %v1202_v13  ;;  %v1225_v33 = vmul.f32 %v1203_v20, %v2260_v46  ;;  %v1226_v42 = vmul.f32 %v1203_v20, %v2270_v0 }
 0x153   : > { %v1227_v51 = vmul.f32 %v1203_v20, %v2265_v57  ;;  %v1228_v3 = vmul.f32 %v1203_v20, %v2272_v6  ;;  %v1229_v61 = vmul.f32 %v1203_v20, %v2280_v19  ;;  %v1230_v7 = vmul.f32 %v1203_v20, %v2290_v35 }
 0x154   : > { %v1231_v17 = vmul.f32 %v1203_v20, %v2285_v28  ;;  %v1232_v31 = vmul.f32 %v1203_v20, %v2292_v41  ;;  %v1233_v25 = vmul.f32 %v1203_v20, %v2300_v55  ;;  %v1234_v36 = vmul.f32 %v1203_v20, %v2310_v12 }
 0x155   : > { %v1235_v46 = vmul.f32 %v1203_v20, %v2305_v4  ;;  %v1236_v0 = vmul.f32 %v1203_v20, %v2312_v15  ;;  %v2361_v44 = vadd.f32 %v1241_v43, %v1205_v23  ;;  %v2363_v57 = vadd.f32 %v1241_v43, %v1206_v24 }
 0x156   : > { %v2365_v6 = vadd.f32 %v1241_v43, %v1207_v27  ;;  %v2367_v19 = vadd.f32 %v1241_v43, %v1208_v29  ;;  %v2369_v35 = vadd.f32 %v1241_v43, %v1209_v30  ;;  %v2371_v28 = vadd.f32 %v1241_v43, %v1210_v32 }
 0x157   : > { %v2373_v41 = vadd.f32 %v1241_v43, %v1211_v34  ;;  %v2375_v55 = vadd.f32 %v1241_v43, %v1212_v37  ;;  %v2377_v12 = vadd.f32 %v1241_v43, %v1213_v39  ;;  %v2379_v4 = vadd.f32 %v1241_v43, %v1214_v40 }
 0x158   : > { %v2381_v15 = vadd.f32 %v1241_v43, %v1215_v50  ;;  %v2383_v45 = vadd.f32 %v1241_v43, %v1216_v54  ;;  %v2385_v47 = vadd.f32 %v1241_v43, %v1217_v53  ;;  %v2387_v48 = vadd.f32 %v1241_v43, %v1218_v58 }
 0x159   : > { %v2389_v49 = vadd.f32 %v1241_v43, %v1219_v2  ;;  %v2391_v52 = vadd.f32 %v1241_v43, %v1220_v14  ;;  %v2393_v56 = vadd.f32 %v1241_v43, %v1221_v9  ;;  %v2395_v59 = vadd.f32 %v1241_v43, %v1222_v18 }
 0x15a   : > { %v2397_v60 = vadd.f32 %v1241_v43, %v1223_v26  ;;  %v2399_v62 = vadd.f32 %v1241_v43, %v1224_v38  ;;  %v2401_v63 = vadd.f32 %v1241_v43, %v1225_v33  ;;  %v2403_v1 = vadd.f32 %v1241_v43, %v1226_v42 }
 0x15b   : > { %v2405_v5 = vadd.f32 %v1241_v43, %v1227_v51  ;;  %v2407_v8 = vadd.f32 %v1241_v43, %v1228_v3  ;;  %v2409_v10 = vadd.f32 %v1241_v43, %v1229_v61  ;;  %v2411_v11 = vadd.f32 %v1241_v43, %v1230_v7 }
 0x15c   : > { %v2413_v13 = vadd.f32 %v1241_v43, %v1231_v17  ;;  %v2415_v16 = vadd.f32 %v1241_v43, %v1232_v31  ;;  %v2417_v20 = vadd.f32 %v1241_v43, %v1233_v25  ;;  %v2419_v21 = vadd.f32 %v1241_v43, %v1234_v36 }
 0x15d   : > { %vm1275_vm2 = vcmp.gt.f32.partialorder %v2361_v44, 0.0  ;;  %vm1276_vm3 = vcmp.gt.f32.partialorder %v2363_v57, 0.0  ;;  %vm1277_vm4 = vcmp.gt.f32.partialorder %v2365_v6, 0.0  ;;  %vm1278_vm5 = vcmp.gt.f32.partialorder %v2367_v19, 0.0 }
 0x15e   : > { %vm1279_vm6 = vcmp.gt.f32.partialorder %v2369_v35, 0.0  ;;  %vm1280_vm7 = vcmp.gt.f32.partialorder %v2371_v28, 0.0  ;;  %vm1281_vm8 = vcmp.gt.f32.partialorder %v2373_v41, 0.0  ;;  %vm1282_vm9 = vcmp.gt.f32.partialorder %v2375_v55, 0.0 }
 0x15f   : > { %vm1283_vm10 = vcmp.gt.f32.partialorder %v2377_v12, 0.0  ;;  %v2431_v22 = vadd.f32 %v1241_v43, %v1235_v46  ;;  %v1307_v23 = vmul.f32 0.01, %v2361_v44  ;;  %v1308_v24 = vmul.f32 0.01, %v2363_v57 }
 0x160   : > { %v1309_v27 = vmul.f32 0.01, %v2365_v6  ;;  %v2440_v29 = vadd.f32 %v1241_v43, %v1236_v0  ;;  %vm1290_vm1 = vcmp.gt.f32.partialorder %v2391_v52, 0.0  ;;  %vm1291_vm12 = vcmp.gt.f32.partialorder %v2393_v56, 0.0 }
 0x161   : > { %v1310_v30 = vmul.f32 0.01, %v2367_v19  ;;  %v1311_v32 = vmul.f32 0.01, %v2369_v35  ;;  %v1312_v34 = vmul.f32 0.01, %v2371_v28  ;;  %v2459_v50 = vsel %vm1275_vm2, %v2361_v44, %v1307_v23 }
 0x162   : > { %vm1296_vm0 = vcmp.gt.f32.partialorder %v2403_v1, 0.0  ;;  %v1313_v37 = vmul.f32 0.01, %v2373_v41  ;;  %v1314_v39 = vmul.f32 0.01, %v2375_v55  ;;  %vm1300_vm11 = vcmp.gt.f32.partialorder %v2411_v11, 0.0 }
 0x163   : > { %v1315_v40 = vmul.f32 0.01, %v2377_v12  ;;  %v1316_v54 = vmul.f32 0.01, %v2379_v4  ;;  %v1317_v53 = vmul.f32 0.01, %v2381_v15  ;;  %v2471_v2 = vsel %vm1276_vm3, %v2363_v57, %v1308_v24 }
 0x164   : > { %v1318_v58 = vmul.f32 0.01, %v2383_v45  ;;  %vm1302_vm13 = vcmp.gt.f32.partialorder %v2415_v16, 0.0  ;;  %vm1303_vm15 = vcmp.gt.f32.partialorder %v2417_v20, 0.0  ;;  %vm1304_vm14 = vcmp.gt.f32.partialorder %v2419_v21, 0.0 }
 0x165   : > { %v1319_v14 = vmul.f32 0.01, %v2385_v47  ;;  %v1320_v9 = vmul.f32 0.01, %v2387_v48  ;;  %v1321_v18 = vmul.f32 0.01, %v2389_v49  ;;  %v1341_v26 = vsel %vm1277_vm4, %v2365_v6, %v1309_v27 }
 0x166   : > { %vm1305_vm3 = vcmp.gt.f32.partialorder %v2431_v22, 0.0  ;;  %vm1306_vm2 = vcmp.gt.f32.partialorder %v2440_v29, 0.0  ;;  %v1322_v38 = vmul.f32 0.01, %v2391_v52  ;;  %v1323_v43 = vmul.f32 0.01, %v2393_v56 }
 0x167   : > { %v1324_v33 = vmul.f32 0.01, %v2395_v59  ;;  %v1342_v42 = vsel %vm1278_vm5, %v2367_v19, %v1310_v30  ;;  %v1325_v51 = vmul.f32 0.01, %v2397_v60  ;;  %v1326_v3 = vmul.f32 0.01, %v2399_v62 }
 0x168   : > { %v1327_v61 = vmul.f32 0.01, %v2401_v63  ;;  %v1343_v7 = vsel %vm1279_vm6, %v2369_v35, %v1311_v32  ;;  %v1328_v17 = vmul.f32 0.01, %v2403_v1  ;;  %v1329_v31 = vmul.f32 0.01, %v2405_v5 }
 0x169   : > { %v1330_v25 = vmul.f32 0.01, %v2407_v8  ;;  %v1344_v36 = vsel %vm1280_vm7, %v2371_v28, %v1312_v34  ;;  %v1331_v46 = vmul.f32 0.01, %v2409_v10  ;;  %v1332_v0 = vmul.f32 0.01, %v2411_v11 }
 0x16a   : > { %v1333_v44 = vmul.f32 0.01, %v2413_v13  ;;  %v1345_v57 = vsel %vm1281_vm8, %v2373_v41, %v1313_v37  ;;  %v1334_v6 = vmul.f32 0.01, %v2415_v16  ;;  %v1335_v19 = vmul.f32 0.01, %v2417_v20 }
 0x16b   : > { %v1336_v35 = vmul.f32 0.01, %v2419_v21  ;;  %v1346_v28 = vsel %vm1282_vm9, %v2375_v55, %v1314_v39  ;;  %v1337_v23 = vmul.f32 0.01, %v2431_v22  ;;  %v1338_v24 = vmul.f32 0.01, %v2440_v29 }
 0x16c   : > { %v1347_v27 = vsel %vm1283_vm10, %v2377_v12, %v1315_v40  ;;  %vm2621_vm4 = vcmp.gt.f32.partialorder %v2379_v4, 0.0  ;;  %vm2622_vm5 = vcmp.gt.f32.partialorder %v2381_v15, 0.0  ;;  %vm2623_vm6 = vcmp.gt.f32.partialorder %v2383_v45, 0.0 }
 0x16d   : > { %v1348_v41 = vsel %vm2621_vm4, %v2379_v4, %v1316_v54  ;;  %v1349_v30 = vsel %vm2622_vm5, %v2381_v15, %v1317_v53  ;;  %v1350_v55 = vsel %vm2623_vm6, %v2383_v45, %v1318_v58  ;;  %vm2624_vm7 = vcmp.gt.f32.partialorder %v2385_v47, 0.0 }
 0x16e   : > { %v1351_v32 = vsel %vm2624_vm7, %v2385_v47, %v1319_v14  ;;  %vm2625_vm8 = vcmp.gt.f32.partialorder %v2387_v48, 0.0  ;;  %vm2626_vm9 = vcmp.gt.f32.partialorder %v2389_v49, 0.0  ;;  %v1354_v15 = vsel %vm1290_vm1, %v2391_v52, %v1322_v38 }
 0x16f   : > { %v1352_v12 = vsel %vm2625_vm8, %v2387_v48, %v1320_v9  ;;  %v1353_v4 = vsel %vm2626_vm9, %v2389_v49, %v1321_v18  ;;  %v1355_v45 = vsel %vm1291_vm12, %v2393_v56, %v1323_v43  ;;  %vm2627_vm10 = vcmp.gt.f32.partialorder %v2395_v59, 0.0 }
 0x170   : > { %v1356_v47 = vsel %vm2627_vm10, %v2395_v59, %v1324_v33  ;;  %vm2628_vm4 = vcmp.gt.f32.partialorder %v2397_v60, 0.0  ;;  %vm2629_vm5 = vcmp.gt.f32.partialorder %v2399_v62, 0.0  ;;  %vm2630_vm6 = vcmp.gt.f32.partialorder %v2401_v63, 0.0 }
 0x171   : > { %v1357_v48 = vsel %vm2628_vm4, %v2397_v60, %v1325_v51  ;;  %v1358_v49 = vsel %vm2629_vm5, %v2399_v62, %v1326_v3  ;;  %v1359_v52 = vsel %vm2630_vm6, %v2401_v63, %v1327_v61  ;;  %v1360_v56 = vsel %vm1296_vm0, %v2403_v1, %v1328_v17 }
 0x172   : > { %vm2631_vm12 = vcmp.gt.f32.partialorder %v2405_v5, 0.0  ;;  %vm2632_vm1 = vcmp.gt.f32.partialorder %v2407_v8, 0.0  ;;  %vm2633_vm7 = vcmp.gt.f32.partialorder %v2409_v10, 0.0  ;;  %v1364_v63 = vsel %vm1300_vm11, %v2411_v11, %v1332_v0 }
 0x173   : > { %v1361_v59 = vsel %vm2631_vm12, %v2405_v5, %v1329_v31  ;;  %v1362_v60 = vsel %vm2632_vm1, %v2407_v8, %v1330_v25  ;;  %v1363_v62 = vsel %vm2633_vm7, %v2409_v10, %v1331_v46  ;;  %vm2634_vm0 = vcmp.gt.f32.partialorder %v2413_v13, 0.0 }
 0x174   : > { %v1365_v1 = vsel %vm2634_vm0, %v2413_v13, %v1333_v44  ;;  %v1366_v5 = vsel %vm1302_vm13, %v2415_v16, %v1334_v6  ;;  %v1367_v8 = vsel %vm1303_vm15, %v2417_v20, %v1335_v19  ;;  %v1368_v10 = vsel %vm1304_vm14, %v2419_v21, %v1336_v35 }
 0x175   : > { %v1369_v11 = vsel %vm1305_vm3, %v2431_v22, %v1337_v23  ;;  %v1370_v13 = vsel %vm1306_vm2, %v2440_v29, %v1338_v24  ;;  %v1747_v16 = vpack.c.bf16 %v2471_v2, %v2459_v50  ;;  %v1752_v20 = vpack.c.bf16 %v1342_v42, %v1341_v26 }
 0x176   : > { %v1757_v34 = vpack.c.bf16 %v1344_v36, %v1343_v7  ;;  %v1762_v37 = vpack.c.bf16 %v1346_v28, %v1345_v57  ;;  %v1767_v39 = vpack.c.bf16 %v1348_v41, %v1347_v27  ;;  %v1772_v21 = vpack.c.bf16 %v1350_v55, %v1349_v30 }
 0x177   : > { %1748 = vst [vmem:[%s2575_s23] sm:$0xff] %v1747_v16   ;;  %1824 = vst [vmem:[%s2575_s23 + $0x8] sm:$0xff] %v1752_v20   ;;  %v1777_v22 = vpack.c.bf16 %v1352_v12, %v1351_v32  ;;  %v1782_v40 = vpack.c.bf16 %v1354_v15, %v1353_v4  ;;  %v1787_v54 = vpack.c.bf16 %v1356_v47, %v1355_v45 }
 0x178   : > { %v1792_v29 = vpack.c.bf16 %v1358_v49, %v1357_v48  ;;  %1825 = vst [vmem:[%s2575_s23 + $0x10] sm:$0xff] %v1757_v34   ;;  %1826 = vst [vmem:[%s2575_s23 + $0x18] sm:$0xff] %v1762_v37   ;;  %v1797_v50 = vpack.c.bf16 %v1360_v56, %v1359_v52  ;;  %v1802_v53 = vpack.c.bf16 %v1362_v60, %v1361_v59 }
 0x179   : > { %1827 = vst [vmem:[%s2575_s23 + $0x20] sm:$0xff] %v1767_v39   ;;  %1828 = vst [vmem:[%s2575_s23 + $0x28] sm:$0xff] %v1772_v21   ;;  %v1807_v58 = vpack.c.bf16 %v1364_v63, %v1363_v62  ;;  %v1812_v2 = vpack.c.bf16 %v1366_v5, %v1365_v1  ;;  %v1817_v14 = vpack.c.bf16 %v1368_v10, %v1367_v8 }
 0x17a   : > { %1829 = vst [vmem:[%s2575_s23 + $0x30] sm:$0xff] %v1777_v22   ;;  %1830 = vst [vmem:[%s2575_s23 + $0x38] sm:$0xff] %v1782_v40   ;;  %v1822_v9 = vpack.c.bf16 %v1370_v13, %v1369_v11 }
 0x17b   : > { %1831 = vst [vmem:[%s2575_s23 + $0x40] sm:$0xff] %v1787_v54   ;;  %1832 = vst [vmem:[%s2575_s23 + $0x48] sm:$0xff] %v1792_v29  }
 0x17c   : > { %1833 = vst [vmem:[%s2575_s23 + $0x50] sm:$0xff] %v1797_v50   ;;  %1834 = vst [vmem:[%s2575_s23 + $0x58] sm:$0xff] %v1802_v53  }
 0x17d   : > { %1835 = vst [vmem:[%s2575_s23 + $0x60] sm:$0xff] %v1807_v58   ;;  %1836 = vst [vmem:[%s2575_s23 + $0x68] sm:$0xff] %v1812_v2  }
 0x17e   : > { %1837 = vst [vmem:[%s2575_s23 + $0x70] sm:$0xff] %v1817_v14   ;;  %1838 = vst [vmem:[%s2575_s23 + $0x78] sm:$0xff] %v1822_v9  }
 0x17f PF: > { %s14_s15 = sadd.s32 1, %s2026_s15  }
 0x180   : > { %p11_p4 = scmp.ge.s32.totalorder %s14_s15, 4  }
 0x182   :  { %13 = sbr.rel (!%p11_p4) target bundleno = 1 (0x1), region = 67 }

// kernel: _lambda_.5
= control target key start
LH: loop header
LB: loop body
LE: loop exit
PB: predicated region body
PF: predicated region fallthrough
CT: control target
= control target key end

     0   :  { %s897_s15 = smov 0   ;;  %s988_s0 = inlined_call_operand.vmem [shape: bf16[2,72,64], index: 0, kind: input, shape index: {}]   ;;  %s989_s1 = inlined_call_operand.vmem [shape: bf16[2,64,128], index: 1, kind: input, shape index: {}]   ;;  %s990_s2 = inlined_call_operand.vmem [shape: f32[1,128], index: 2, kind: input, shape index: {}]   ;;  %s991_s3 = inlined_call_operand.vmem [shape: f32[1,128], index: 3, kind: input, shape index: {}]   ;;  %s992_s4 = inlined_call_operand.vmem [shape: bf16[2,64,128], index: 4, kind: output, shape index: {}]  }
   0x1 LB: > { %s707_s16 = sadd.s32 4294967295, %s870_s15   ;;  %p711_p0 = scmp.ge.s32.totalorder %s870_s15, 1  ;;  %s870_s15 = sphi %s897_s15, %s14_s15  }
   0x2   : > { %p162_p1 = scmp.lt.s32.totalorder %s870_s15, 3 }
   0x4   : > { %p163_p2 = pnand %p711_p0, %p162_p1 }
   0x5   : > { %p188_p3 = scmp.lt.s32.totalorder (!%p163_p2), %s707_s16, 1 }
   0x6   : > { %166 = sbr.rel (%p163_p2) target bundleno = 298 (0x12a), region = 36 }
   0xb   : > { %v846_v0 = vld [vmem:[%s989_s1 + $0x18] sm:$0xff]   ;;  %v848_v2 = vld [vmem:[%s989_s1 + $0x10] sm:$0xff]   ;;  %s994_s16 = smov (!%p188_p3, %s707_s16), 1  ;;  %v850_v4 = vld [vmem:[%s989_s1 + $0x8] sm:$0xff]   ;;  %vm259_vm0 = vcmask 523264  }
   0xc   : > { %v847_v1 = vld [vmem:[%s989_s1 + $0x38] sm:$0xff]   ;;  %805 = vmatprep.subr.bf16.mxu0 %v846_v0  ;;  %v849_v3 = vld [vmem:[%s989_s1 + $0x30] sm:$0xff]   ;;  %s837_s27 = smul.u32 36, %s994_s16  ;;  %v851_v5 = vld [vmem:[%s989_s1 + $0x28] sm:$0xff]   ;;  %s757_s17 = sshll.u32 %s994_s16, 5 }
   0xd   : > { %821 = vmatprep.subr.bf16.mxu1 %v847_v1  ;;  %806 = vmatpush3.bf16.msra.mxu0 %v846_v0  ;;  %v852_v6 = vld [vmem:[%s989_s1] sm:$0xff]   ;;  %s197_s16 = scalar_lea.vmem %s992_s4, %s757_s17 }
   0xe   : > { %822 = vmatpush3.bf16.msra.mxu1 %v847_v1  ;;  %807 = vmatprep.subr.bf16.mxu0 %v848_v2  ;;  %s192_s8 = scalar_lea.vmem %s988_s0, %s837_s27  ;;  %v853_v7 = vld [vmem:[%s989_s1 + $0x20] sm:$0xff]  }
   0xf   : > { %823 = vmatprep.subr.bf16.mxu1 %v849_v3  ;;  %v854_v8 = vld [vmem:[%s192_s8] sm:$0xff]   ;;  %v856_v10 = vld [vmem:[%s192_s8 + $0x8] sm:$0xff]   ;;  %v858_v12 = vld [vmem:[%s192_s8 + $0x10] sm:$0xff]  }
  0x10   : > { %v855_v9 = vld [vmem:[%s192_s8 + $0x4] sm:$0xff]   ;;  %813 = vmatprep.mubr.msk.bf16.mxu0 %vm259_vm0, %v854_v8  ;;  %v857_v11 = vld [vmem:[%s192_s8 + $0xc] sm:$0xff]   ;;  %v859_v13 = vld [vmem:[%s192_s8 + $0x14] sm:$0xff]  }
  0x11   : > { %808 = vmatpush3.bf16.msra.mxu0 %v848_v2  ;;  %829 = vmatprep.mubr.msk.bf16.mxu1 %vm259_vm0, %v855_v9  ;;  %v860_v14 = vld [vmem:[%s192_s8 + $0x18] sm:$0xff]  }
  0x12   : > { %824 = vmatpush3.bf16.msra.mxu1 %v849_v3  ;;  %809 = vmatprep.subr.bf16.mxu0 %v850_v4  ;;  %v861_v15 = vld [vmem:[%s192_s8 + $0x1c] sm:$0xff]  }
  0x13   : > { %825 = vmatprep.subr.bf16.mxu1 %v851_v5 }
  0x15   : > { %810 = vmatpush3.bf16.msra.mxu0 %v850_v4 }
  0x16   : > { %826 = vmatpush3.bf16.msra.mxu1 %v851_v5  ;;  %811 = vmatprep.subr.bf16.mxu0 %v852_v6 }
  0x17   : > { %827 = vmatprep.subr.bf16.mxu1 %v853_v7 }
  0x19   : > { %812 = vmatpush3.bf16.msra.mxu0 %v852_v6 }
  0x1a   : > { %828 = vmatpush3.bf16.msra.mxu1 %v853_v7 }
  0x1c   : > { %814 = vmatmul.mubr.msk.bf16.vlgmr.msra.gmra.mxu0 %vm259_vm0, %v856_v10 }
  0x1d   : > { %830 = vmatmul.mubr.msk.bf16.vlgmr.msra.gmra.mxu1 %vm259_vm0, %v857_v11  ;;  %817 = vmatprep.mubr.msk.bf16.mxu0 %vm259_vm0, %v858_v12 }
  0x1e   : > { %833 = vmatprep.mubr.msk.bf16.mxu1 %vm259_vm0, %v859_v13 }
  0x24   : > { %818 = vmatmul.mubr.msk.bf16.gmra.mxu0 %vm259_vm0, %v860_v14 }
  0x25   : > { %834 = vmatmul.mubr.msk.bf16.gmra.mxu1 %vm259_vm0, %v861_v15  ;;  %v561_v15 = vlaneseq }
  0xdc   : > { %v815_v16 = vpop.f32.mrf.mxu0 }
  0xdd   : > { %v831_v17 = vpop.f32.mrf.mxu1 }
  0xde   : > { %v306_v18 = vpop.f32.mrf.mxu0  ;;  %v945_v25 = vadd.f32 %v831_v17, %v815_v16  ;;  %v562_v16 = vshrl.u32 %v561_v15, 7  ;;  %v553_v17 = vld [vmem:[%s990_s2] sm:$0x1] }
  0xdf   : > { %v452_v19 = vpop.f32.mrf.mxu1 }
  0xe0   : > { %v816_v20 = vpop.f32.mrf.mxu0  ;;  %v943_v22 = vadd.f32 %v452_v19, %v306_v18  ;;  %v530_v35 = vmul.f32 %v945_v25, %v945_v25  ;;  %v563_v18 = vsub.s32 0, %v562_v16 }
  0xe1   : > { %v832_v21 = vpop.f32.mrf.mxu1 }
  0xe2   : > { %v309_v23 = vpop.f32.mrf.mxu0  ;;  %v528_v29 = vmul.f32 %v943_v22, %v943_v22  ;;  %v951_v30 = vadd.f32 %v832_v21, %v816_v20  ;;  %v557_v21 = vld [vmem:[%s991_s3] sm:$0x1] }
  0xe3   : > { %v455_v24 = vpop.f32.mrf.mxu1 }
  0xe4   : > { %v947_v26 = vadd.f32 %v455_v24, %v309_v23  ;;  %v819_v27 = vpop.f32.mrf.mxu0  ;;  %v531_v41 = vmul.f32 %v951_v30, %v951_v30 }
  0xe5   : > { %v835_v28 = vpop.f32.mrf.mxu1 }
  0xe6   : > { %v515_v31 = vadd.f32 %v947_v26, %v943_v22  ;;  %v529_v32 = vmul.f32 %v947_v26, %v947_v26  ;;  %v322_v33 = vpop.f32.mrf.mxu0  ;;  %v497_v45 = vadd.f32 %v835_v28, %v819_v27 }
  0xe7   : > { %v468_v34 = vpop.f32.mrf.mxu1 }
  0xe8   : > { %v516_v36 = vadd.f32 %v515_v31, %v945_v25  ;;  %v536_v37 = vadd.f32 %v529_v32, %v528_v29  ;;  %v495_v38 = vadd.f32 %v468_v34, %v322_v33  ;;  %v820_v39 = vpop.f32.mrf.mxu0  ;;  %v534_v55 = vmul.f32 %v497_v45, %v497_v45 }
  0xe9   : > { %v836_v40 = vpop.f32.mrf.mxu1 }
  0xea   : > { %v537_v42 = vadd.f32 %v536_v37, %v530_v35  ;;  %v517_v43 = vadd.f32 %v516_v36, %v951_v30  ;;  %v325_v44 = vpop.f32.mrf.mxu0  ;;  %v532_v48 = vmul.f32 %v495_v38, %v495_v38  ;;  %v498_v52 = vadd.f32 %v836_v40, %v820_v39 }
  0xeb   : > { %v471_v46 = vpop.f32.mrf.mxu1 }
  0xec   : > { %v518_v47 = vadd.f32 %v517_v43, %v495_v38  ;;  %v538_v49 = vadd.f32 %v537_v42, %v531_v41  ;;  %v496_v50 = vadd.f32 %v471_v46, %v325_v44  ;;  %v535_v58 = vmul.f32 %v498_v52, %v498_v52 }
  0xee   : > { %v539_v51 = vadd.f32 %v538_v49, %v532_v48  ;;  %v519_v53 = vadd.f32 %v518_v47, %v496_v50  ;;  %v533_v54 = vmul.f32 %v496_v50, %v496_v50 }
  0xf0   : > { %v520_v56 = vadd.f32 %v519_v53, %v497_v45  ;;  %v540_v57 = vadd.f32 %v539_v51, %v533_v54 }
  0xf2   : > { %v521_v59 = vadd.f32 %v520_v56, %v498_v52  ;;  %v541_v60 = vadd.f32 %v540_v57, %v534_v55 }
  0xf4   : > { %v522_v61 = vrot.slane %v521_v59, 4  ;;  %v542_v62 = vadd.f32 %v541_v60, %v535_v58 }
  0xf6   : > { %v523_v63 = vadd.f32 %v522_v61, %v521_v59  ;;  %v543_v0 = vrot.slane %v542_v62, 4 }
  0xf8   : > { %v524_v1 = vrot.slane %v523_v63, 2  ;;  %v544_v2 = vadd.f32 %v543_v0, %v542_v62 }
  0xfa   : > { %v525_v3 = vadd.f32 %v524_v1, %v523_v63  ;;  %v545_v4 = vrot.slane %v544_v2, 2 }
  0xfc   : > { %v526_v5 = vrot.slane %v525_v3, 1  ;;  %v546_v6 = vadd.f32 %v545_v4, %v544_v2 }
  0xfe   : > { %v527_v7 = vadd.f32 %v526_v5, %v525_v3  ;;  %v547_v8 = vrot.slane %v546_v6, 1 }
 0x100   : > { %v548_v9 = vadd.f32 %v547_v8, %v546_v6  ;;  %v549_v10 = vmul.f32 0.015625, %v527_v7 }
 0x102   : > { %v550_v11 = vmul.f32 0.015625, %v548_v9  ;;  %v551_v12 = vmul.f32 %v549_v10, %v549_v10 }
 0x104   : > { %v552_v13 = vsub.f32 %v550_v11, %v551_v12 }
 0x106   : > { %v554_v14 = vadd.f32 1e-05, %v552_v13 }
 0x108   : > { %862 = vrsqrt.f32 %v554_v14 }
 0x115   : > { %v863_v19 = vpop.eup %862 }
 0x116   : > { %v556_v20 = vmul.f32 %v863_v19, %v553_v17 }
 0x118   : > { %v558_v23 = vmul.f32 %v556_v20, %v549_v10  ;;  %v564_v24 = vrot.slane %v556_v20, %v563_v18 }
 0x11a   : > { %v559_v27 = vsub.f32 %v557_v21, %v558_v23  ;;  %v566_v28 = vmul.f32 %v564_v24, %v943_v22  ;;  %v567_v29 = vmul.f32 %v564_v24, %v947_v26  ;;  %v568_v31 = vmul.f32 %v564_v24, %v945_v25 }
 0x11b   : > { %v569_v32 = vmul.f32 %v564_v24, %v951_v30  ;;  %v570_v34 = vmul.f32 %v564_v24, %v495_v38  ;;  %v571_v35 = vmul.f32 %v564_v24, %v496_v50  ;;  %v572_v36 = vmul.f32 %v564_v24, %v497_v45 }
 0x11c   : > { %v578_v33 = vrot.slane %v559_v27, %v563_v18  ;;  %v573_v37 = vmul.f32 %v564_v24, %v498_v52 }
 0x11e   : > { %v580_v39 = vadd.f32 %v578_v33, %v566_v28  ;;  %v581_v40 = vadd.f32 %v578_v33, %v567_v29  ;;  %v582_v41 = vadd.f32 %v578_v33, %v568_v31  ;;  %v583_v42 = vadd.f32 %v578_v33, %v569_v32 }
 0x11f   : > { %v584_v43 = vadd.f32 %v578_v33, %v570_v34  ;;  %v585_v44 = vadd.f32 %v578_v33, %v571_v35  ;;  %v586_v46 = vadd.f32 %v578_v33, %v572_v36  ;;  %v587_v22 = vadd.f32 %v578_v33, %v573_v37 }
 0x120   : > { %vm588_vm1 = vcmp.gt.f32.partialorder %v580_v39, 0.0  ;;  %vm589_vm2 = vcmp.gt.f32.partialorder %v581_v40, 0.0  ;;  %vm590_vm3 = vcmp.gt.f32.partialorder %v582_v41, 0.0  ;;  %vm591_vm4 = vcmp.gt.f32.partialorder %v583_v42, 0.0 }
 0x121   : > { %vm592_vm5 = vcmp.gt.f32.partialorder %v584_v43, 0.0  ;;  %vm593_vm6 = vcmp.gt.f32.partialorder %v585_v44, 0.0  ;;  %vm594_vm7 = vcmp.gt.f32.partialorder %v586_v46, 0.0  ;;  %vm595_vm8 = vcmp.gt.f32.partialorder %v587_v22, 0.0 }
 0x122   : > { %v596_v25 = vmul.f32 0.01, %v580_v39  ;;  %v597_v26 = vmul.f32 0.01, %v581_v40  ;;  %v598_v30 = vmul.f32 0.01, %v582_v41 }
 0x123   : > { %v599_v38 = vmul.f32 0.01, %v583_v42  ;;  %v600_v45 = vmul.f32 0.01, %v584_v43  ;;  %v601_v47 = vmul.f32 0.01, %v585_v44 }
 0x124   : > { %v602_v48 = vmul.f32 0.01, %v586_v46  ;;  %v603_v49 = vmul.f32 0.01, %v587_v22  ;;  %v604_v50 = vsel %vm588_vm1, %v580_v39, %v596_v25  ;;  %v605_v51 = vsel %vm589_vm2, %v581_v40, %v597_v26 }
 0x125   : > { %v606_v52 = vsel %vm590_vm3, %v582_v41, %v598_v30  ;;  %v607_v53 = vsel %vm591_vm4, %v583_v42, %v599_v38  ;;  %v608_v54 = vsel %vm592_vm5, %v584_v43, %v600_v45  ;;  %v609_v55 = vsel %vm593_vm6, %v585_v44, %v601_v47 }
 0x126   : > { %v610_v56 = vsel %vm594_vm7, %v586_v46, %v602_v48  ;;  %v611_v57 = vsel %vm595_vm8, %v587_v22, %v603_v49  ;;  %v769_v58 = vpack.c.bf16 %v605_v51, %v604_v50  ;;  %v774_v59 = vpack.c.bf16 %v607_v53, %v606_v52 }
 0x127   : > { %v779_v60 = vpack.c.bf16 %v609_v55, %v608_v54  ;;  %v784_v61 = vpack.c.bf16 %v611_v57, %v610_v56 }
 0x128   : > { %770 = vst [vmem:[%s197_s16] sm:$0xff] %v769_v58   ;;  %786 = vst [vmem:[%s197_s16 + $0x8] sm:$0xff] %v774_v59  }
 0x129   : > { %787 = vst [vmem:[%s197_s16 + $0x10] sm:$0xff] %v779_v60   ;;  %788 = vst [vmem:[%s197_s16 + $0x18] sm:$0xff] %v784_v61  }
 0x12a PF: > { %s14_s15 = sadd.s32 1, %s870_s15  }
 0x12b   : > { %p11_p4 = scmp.ge.s32.totalorder %s14_s15, 4  }
 0x12d   :  { %13 = sbr.rel (!%p11_p4) target bundleno = 1 (0x1), region = 67 }

// kernel: _lambda_.6
= control target key start
LH: loop header
LB: loop body
LE: loop exit
PB: predicated region body
PF: predicated region fallthrough
CT: control target
= control target key end

     0   :  { %s915_s15 = smov 0   ;;  %s1042_s0 = inlined_call_operand.vmem [shape: bf16[2,20,256], index: 0, kind: input, shape index: {}]   ;;  %s1043_s1 = inlined_call_operand.vmem [shape: bf16[2,256,128], index: 1, kind: input, shape index: {}]   ;;  %s1044_s2 = inlined_call_operand.vmem [shape: f32[1,128], index: 2, kind: input, shape index: {}]   ;;  %s1045_s3 = inlined_call_operand.vmem [shape: f32[1,128], index: 3, kind: input, shape index: {}]   ;;  %s1046_s4 = inlined_call_operand.vmem [shape: bf16[2,16,128], index: 4, kind: output, shape index: {}]  }
   0x1 LB: > { %s699_s16 = sadd.s32 4294967295, %s888_s15   ;;  %p703_p0 = scmp.ge.s32.totalorder %s888_s15, 1  ;;  %s888_s15 = sphi %s915_s15, %s14_s15  }
   0x2   : > { %p162_p1 = scmp.lt.s32.totalorder %s888_s15, 3 }
   0x4   : > { %p163_p2 = pnand %p703_p0, %p162_p1 }
   0x5   : > { %p188_p3 = scmp.lt.s32.totalorder (!%p163_p2), %s699_s16, 1 }
   0x6   : > { %166 = sbr.rel (%p163_p2) target bundleno = 301 (0x12d), region = 36 }
   0xb   : > { %v842_v0 = vld [vmem:[%s1043_s1 + $0x78] sm:$0xff]   ;;  %v846_v4 = vld [vmem:[%s1043_s1 + $0x70] sm:$0xff]   ;;  %v850_v8 = vld [vmem:[%s1043_s1 + $0x68] sm:$0xff]   ;;  %s1048_s16 = smov (!%p188_p3, %s699_s16), 1  ;;  %vm431_vm0 = vcmask 1045504  }
   0xc   : > { %v843_v1 = vld [vmem:[%s1043_s1 + $0xf8] sm:$0xff]   ;;  %789 = vmatprep.subr.bf16.mxu0 %v842_v0  ;;  %v847_v5 = vld [vmem:[%s1043_s1 + $0xf0] sm:$0xff]   ;;  %v851_v9 = vld [vmem:[%s1043_s1 + $0xe8] sm:$0xff]   ;;  %s833_s21 = smul.u32 24, %s1048_s16  ;;  %s781_s17 = sshll.u32 %s1048_s16, 3 }
   0xd   : > { %v844_v2 = vld [vmem:[%s1043_s1 + $0x38] sm:$0xff]   ;;  %811 = vmatprep.subr.bf16.mxu1 %v843_v1  ;;  %v848_v6 = vld [vmem:[%s1043_s1 + $0x30] sm:$0xff]   ;;  %v852_v10 = vld [vmem:[%s1043_s1 + $0x28] sm:$0xff]   ;;  %s197_s20 = scalar_lea.vmem %s1046_s4, %s781_s17 }
   0xe   : > { %v845_v3 = vld [vmem:[%s1043_s1 + $0xb8] sm:$0xff]   ;;  %790 = vmatpush3.bf16.msra.mxu0 %v844_v2  ;;  %v849_v7 = vld [vmem:[%s1043_s1 + $0xb0] sm:$0xff]   ;;  %v853_v11 = vld [vmem:[%s1043_s1 + $0xa8] sm:$0xff]   ;;  %s192_s6 = scalar_lea.vmem %s1042_s0, %s833_s21 }
   0xf   : > { %812 = vmatpush3.bf16.msra.mxu1 %v845_v3  ;;  %791 = vmatprep.subr.bf16.mxu0 %v846_v4  ;;  %v854_v12 = vld [vmem:[%s1043_s1 + $0x60] sm:$0xff]   ;;  %v858_v16 = vld [vmem:[%s1043_s1 + $0x58] sm:$0xff]   ;;  %v862_v20 = vld [vmem:[%s1043_s1 + $0x50] sm:$0xff]  }
  0x10   : > { %813 = vmatprep.subr.bf16.mxu1 %v847_v5  ;;  %v855_v13 = vld [vmem:[%s1043_s1 + $0xe0] sm:$0xff]   ;;  %v859_v17 = vld [vmem:[%s1043_s1 + $0xd8] sm:$0xff]   ;;  %v863_v21 = vld [vmem:[%s1043_s1 + $0xd0] sm:$0xff]  }
  0x11   : > { %v856_v14 = vld [vmem:[%s1043_s1 + $0x20] sm:$0xff]   ;;  %v860_v18 = vld [vmem:[%s1043_s1 + $0x18] sm:$0xff]   ;;  %v864_v22 = vld [vmem:[%s1043_s1 + $0x10] sm:$0xff]  }
  0x12   : > { %792 = vmatpush3.bf16.msra.mxu0 %v848_v6  ;;  %v857_v15 = vld [vmem:[%s1043_s1 + $0xa0] sm:$0xff]   ;;  %v861_v19 = vld [vmem:[%s1043_s1 + $0x98] sm:$0xff]   ;;  %v865_v23 = vld [vmem:[%s1043_s1 + $0x90] sm:$0xff]  }
  0x13   : > { %814 = vmatpush3.bf16.msra.mxu1 %v849_v7  ;;  %793 = vmatprep.subr.bf16.mxu0 %v850_v8  ;;  %v866_v24 = vld [vmem:[%s1043_s1 + $0x48] sm:$0xff]   ;;  %v870_v28 = vld [vmem:[%s1043_s1 + $0x40] sm:$0xff]   ;;  %v384_v37 = vld [vmem:[%s192_s6 + $0x10] sm:$0x33] }
  0x14   : > { %815 = vmatprep.subr.bf16.mxu1 %v851_v9  ;;  %v867_v25 = vld [vmem:[%s1043_s1 + $0xc8] sm:$0xff]   ;;  %v871_v29 = vld [vmem:[%s1043_s1 + $0xc0] sm:$0xff]   ;;  %v760_v40 = vcombine.high %v384_v37, %v384_v37  ;;  %v759_v41 = vcombine.low %v384_v37, %v384_v37 }
  0x15   : > { %v868_v26 = vld [vmem:[%s1043_s1 + $0x8] sm:$0xff]   ;;  %v872_v30 = vld [vmem:[%s1043_s1] sm:$0xff]  }
  0x16   : > { %794 = vmatpush3.bf16.msra.mxu0 %v852_v10  ;;  %v869_v27 = vld [vmem:[%s1043_s1 + $0x88] sm:$0xff]   ;;  %v873_v31 = vld [vmem:[%s1043_s1 + $0x80] sm:$0xff]   ;;  %v436_v44 = vrot.slane %v760_v40, 2  ;;  %v433_v45 = vrot.slane %v759_v41, 2 }
  0x17   : > { %816 = vmatpush3.bf16.msra.mxu1 %v853_v11  ;;  %795 = vmatprep.subr.bf16.mxu0 %v854_v12  ;;  %v199_v32 = vld [vmem:[%s192_s6] sm:$0xff]  ;;  %v200_v33 = vld [vmem:[%s192_s6 + $0x8] sm:$0xff] }
  0x18   : > { %817 = vmatprep.subr.bf16.mxu1 %v855_v13  ;;  %v382_v34 = vld [vmem:[%s192_s6] sm:$0xcc]  ;;  %v707_v35 = vcombine.low %v199_v32, %v200_v33  ;;  %v708_v36 = vcombine.high %v199_v32, %v200_v33 }
  0x19   : > { %v758_v38 = vcombine.high %v382_v34, %v200_v33  ;;  %v757_v39 = vcombine.low %v382_v34, %v200_v33 }
  0x1a   : > { %796 = vmatpush3.bf16.msra.mxu0 %v856_v14  ;;  %371 = vmatprep.mubr.bf16.mxu0 %v708_v36 }
  0x1b   : > { %818 = vmatpush3.bf16.msra.mxu1 %v857_v15  ;;  %797 = vmatprep.subr.bf16.mxu0 %v858_v16  ;;  %v435_v42 = vrot.slane %v758_v38, 2  ;;  %v432_v43 = vrot.slane %v757_v39, 2 }
  0x1c   : > { %819 = vmatprep.subr.bf16.mxu1 %v859_v17 }
  0x1d   : > { %v437_v46 = vsel %vm431_vm0, %v435_v42, %v436_v44  ;;  %v434_v47 = vsel %vm431_vm0, %v432_v43, %v433_v45 }
  0x1e   : > { %798 = vmatpush3.bf16.msra.mxu0 %v860_v18  ;;  %568 = vmatprep.mubr.bf16.mxu1 %v437_v46 }
  0x1f   : > { %820 = vmatpush3.bf16.msra.mxu1 %v861_v19  ;;  %799 = vmatprep.subr.bf16.mxu0 %v862_v20  ;;  %v613_v19 = vlaneseq }
  0x20   : > { %821 = vmatprep.subr.bf16.mxu1 %v863_v21  ;;  %v605_v21 = vld [vmem:[%s1044_s2] sm:$0x1] }
  0x21   : > { %v614_v20 = vshrl.u32 %v613_v19, 7 }
  0x22   : > { %800 = vmatpush3.bf16.msra.mxu0 %v864_v22 }
  0x23   : > { %822 = vmatpush3.bf16.msra.mxu1 %v865_v23  ;;  %801 = vmatprep.subr.bf16.mxu0 %v866_v24  ;;  %v615_v22 = vsub.s32 0, %v614_v20 }
  0x24   : > { %823 = vmatprep.subr.bf16.mxu1 %v867_v25  ;;  %v609_v25 = vld [vmem:[%s1045_s3] sm:$0x1] }
  0x26   : > { %802 = vmatpush3.bf16.msra.mxu0 %v868_v26 }
  0x27   : > { %824 = vmatpush3.bf16.msra.mxu1 %v869_v27  ;;  %803 = vmatprep.subr.bf16.mxu0 %v870_v28 }
  0x28   : > { %825 = vmatprep.subr.bf16.mxu1 %v871_v29 }
  0x2a   : > { %804 = vmatpush3.bf16.msra.mxu0 %v872_v30 }
  0x2b   : > { %826 = vmatpush3.bf16.msra.mxu1 %v873_v31 }
  0x2d   : > { %372 = vmatmul.mubr.bf16.vlgmr.msra.gmra.mxu0 %v707_v35 }
  0x2e   : > { %569 = vmatmul.mubr.bf16.vlgmr.msra.gmra.mxu1 %v434_v47 }
  0xed   : > { %v805_v48 = vpop.f32.mrf.mxu0 }
  0xee   : > { %v827_v50 = vpop.f32.mrf.mxu1 }
  0xef   : > { %v806_v49 = vpop.f32.mrf.mxu0 }
  0xf0   : > { %v828_v52 = vpop.f32.mrf.mxu1  ;;  %v807_v54 = vadd.f32 %v806_v49, %v805_v48 }
  0xf1   : > { %v808_v51 = vpop.f32.mrf.mxu0  ;;  %v829_v55 = vadd.f32 %v828_v52, %v827_v50 }
  0xf2   : > { %v830_v56 = vpop.f32.mrf.mxu1 }
  0xf3   : > { %v809_v53 = vpop.f32.mrf.mxu0  ;;  %v579_v59 = vadd.f32 %v829_v55, %v807_v54 }
  0xf4   : > { %v810_v57 = vadd.f32 %v809_v53, %v808_v51  ;;  %v831_v58 = vpop.f32.mrf.mxu1 }
  0xf5   : > { %v832_v60 = vadd.f32 %v831_v58, %v830_v56  ;;  %v592_v62 = vmul.f32 %v579_v59, %v579_v59 }
  0xf7   : > { %v580_v61 = vadd.f32 %v832_v60, %v810_v57 }
  0xf9   : > { %v585_v63 = vadd.f32 %v580_v61, %v579_v59  ;;  %v593_v0 = vmul.f32 %v580_v61, %v580_v61 }
  0xfb   : > { %v586_v1 = vrot.slane %v585_v63, 4  ;;  %v594_v2 = vadd.f32 %v593_v0, %v592_v62 }
  0xfd   : > { %v587_v3 = vadd.f32 %v586_v1, %v585_v63  ;;  %v595_v4 = vrot.slane %v594_v2, 4 }
  0xff   : > { %v588_v5 = vrot.slane %v587_v3, 2  ;;  %v596_v6 = vadd.f32 %v595_v4, %v594_v2 }
 0x101   : > { %v589_v7 = vadd.f32 %v588_v5, %v587_v3  ;;  %v597_v8 = vrot.slane %v596_v6, 2 }
 0x103   : > { %v590_v9 = vrot.slane %v589_v7, 1  ;;  %v598_v10 = vadd.f32 %v597_v8, %v596_v6 }
 0x105   : > { %v591_v11 = vadd.f32 %v590_v9, %v589_v7  ;;  %v599_v12 = vrot.slane %v598_v10, 1 }
 0x107   : > { %v600_v13 = vadd.f32 %v599_v12, %v598_v10  ;;  %v601_v14 = vmul.f32 0.0625, %v591_v11 }
 0x109   : > { %v602_v15 = vmul.f32 0.0625, %v600_v13  ;;  %v603_v16 = vmul.f32 %v601_v14, %v601_v14 }
 0x10b   : > { %v604_v17 = vsub.f32 %v602_v15, %v603_v16 }
 0x10d   : > { %v606_v18 = vadd.f32 1e-05, %v604_v17 }
 0x10f   : > { %880 = vrsqrt.f32 %v606_v18 }
 0x11c   : > { %v881_v23 = vpop.eup %880 }
 0x11d   : > { %v608_v24 = vmul.f32 %v881_v23, %v605_v21 }
 0x11f   : > { %v610_v26 = vmul.f32 %v608_v24, %v601_v14  ;;  %v616_v27 = vrot.slane %v608_v24, %v615_v22 }
 0x121   : > { %v611_v28 = vsub.f32 %v609_v25, %v610_v26  ;;  %v618_v29 = vmul.f32 %v616_v27, %v579_v59  ;;  %v619_v30 = vmul.f32 %v616_v27, %v580_v61 }
 0x123   : > { %v624_v31 = vrot.slane %v611_v28, %v615_v22 }
 0x125   : > { %v626_v32 = vadd.f32 %v624_v31, %v618_v29  ;;  %v627_v33 = vadd.f32 %v624_v31, %v619_v30 }
 0x127   : > { %vm628_vm1 = vcmp.gt.f32.partialorder %v626_v32, 0.0  ;;  %vm629_vm2 = vcmp.gt.f32.partialorder %v627_v33, 0.0  ;;  %v630_v34 = vmul.f32 0.01, %v626_v32  ;;  %v631_v35 = vmul.f32 0.01, %v627_v33 }
 0x129   : > { %v632_v36 = vsel %vm628_vm1, %v626_v32, %v630_v34  ;;  %v633_v37 = vsel %vm629_vm2, %v627_v33, %v631_v35 }
 0x12a   : > { %v787_v38 = vpack.c.bf16 %v633_v37, %v632_v36 }
 0x12c   : > { %788 = vst [vmem:[%s197_s20] sm:$0xff] %v787_v38  }
 0x12d PF: > { %s14_s15 = sadd.s32 1, %s888_s15  }
 0x12e   : > { %p11_p4 = scmp.ge.s32.totalorder %s14_s15, 4  }
 0x130   :  { %13 = sbr.rel (!%p11_p4) target bundleno = 1 (0x1), region = 67 }

// kernel: _lambda_.7
= control target key start
LH: loop header
LB: loop body
LE: loop exit
PB: predicated region body
PF: predicated region fallthrough
CT: control target
= control target key end

     0   :  { %s858_s15 = smov 0   ;;  %s985_s0 = inlined_call_operand.vmem [shape: bf16[2,6,256], index: 0, kind: input, shape index: {}]   ;;  %s986_s1 = inlined_call_operand.vmem [shape: bf16[2,256,128], index: 1, kind: input, shape index: {}]   ;;  %s987_s2 = inlined_call_operand.vmem [shape: f32[1,128], index: 2, kind: input, shape index: {}]   ;;  %s988_s3 = inlined_call_operand.vmem [shape: f32[1,128], index: 3, kind: input, shape index: {}]   ;;  %s989_s4 = inlined_call_operand.vmem [shape: bf16[2,4,128], index: 4, kind: output, shape index: {}]  }
   0x1 LB: > { %s656_s16 = sadd.s32 4294967295, %s831_s15   ;;  %p660_p0 = scmp.ge.s32.totalorder %s831_s15, 1  ;;  %s831_s15 = sphi %s858_s15, %s14_s15  }
   0x2   : > { %p162_p1 = scmp.lt.s32.totalorder %s831_s15, 3 }
   0x4   : > { %p163_p2 = pnand %p660_p0, %p162_p1 }
   0x5   : > { %p187_p3 = scmp.lt.s32.totalorder (!%p163_p2), %s656_s16, 1 }
   0x6   : > { %166 = sbr.rel (%p163_p2) target bundleno = 310 (0x136), region = 36 }
   0xb   : > { %v787_v0 = vld [vmem:[%s986_s1 + $0x78] sm:$0xff]   ;;  %v791_v4 = vld [vmem:[%s986_s1 + $0x70] sm:$0xff]   ;;  %v795_v8 = vld [vmem:[%s986_s1 + $0x68] sm:$0xff]   ;;  %s991_s16 = smov (!%p187_p3, %s656_s16), 1  ;;  %vm557_vm0 = vcmask 1043456  }
   0xc   : > { %v788_v1 = vld [vmem:[%s986_s1 + $0x38] sm:$0xff]   ;;  %735 = vmatprep.subr.bf16.mxu0 %v787_v0  ;;  %v792_v5 = vld [vmem:[%s986_s1 + $0x30] sm:$0xff]   ;;  %v796_v9 = vld [vmem:[%s986_s1 + $0x28] sm:$0xff]   ;;  %s734_s21 = sshll.u32 %s991_s16, 3  ;;  %s663_s17 = sshll.u32 %s991_s16, 1 }
   0xd   : > { %v789_v2 = vld [vmem:[%s986_s1 + $0xf8] sm:$0xff]   ;;  %736 = vmatpush3.bf16.msra.mxu0 %v788_v1  ;;  %v793_v6 = vld [vmem:[%s986_s1 + $0xf0] sm:$0xff]   ;;  %v797_v10 = vld [vmem:[%s986_s1 + $0xe8] sm:$0xff]   ;;  %s191_s30 = scalar_lea.vmem %s985_s0, %s734_s21  ;;  %s195_s20 = scalar_lea.vmem %s989_s4, %s663_s17 }
   0xe   : > { %v790_v3 = vld [vmem:[%s986_s1 + $0xb8] sm:$0xff]   ;;  %757 = vmatprep.subr.bf16.mxu1 %v789_v2  ;;  %737 = vmatprep.subr.bf16.mxu0 %v791_v4  ;;  %v794_v7 = vld [vmem:[%s986_s1 + $0xb0] sm:$0xff]   ;;  %v798_v11 = vld [vmem:[%s986_s1 + $0xa8] sm:$0xff]  }
   0xf   : > { %758 = vmatpush3.bf16.msra.mxu1 %v790_v3  ;;  %v799_v12 = vld [vmem:[%s986_s1 + $0x60] sm:$0xff]   ;;  %v803_v16 = vld [vmem:[%s986_s1 + $0x58] sm:$0xff]   ;;  %v807_v20 = vld [vmem:[%s986_s1 + $0x50] sm:$0xff]  }
  0x10   : > { %759 = vmatprep.subr.bf16.mxu1 %v793_v6  ;;  %v800_v13 = vld [vmem:[%s986_s1 + $0x20] sm:$0xff]   ;;  %v804_v17 = vld [vmem:[%s986_s1 + $0x18] sm:$0xff]   ;;  %v808_v21 = vld [vmem:[%s986_s1 + $0x10] sm:$0xff]  }
  0x11   : > { %738 = vmatpush3.bf16.msra.mxu0 %v792_v5  ;;  %v801_v14 = vld [vmem:[%s986_s1 + $0xe0] sm:$0xff]   ;;  %v805_v18 = vld [vmem:[%s986_s1 + $0xd8] sm:$0xff]   ;;  %v809_v22 = vld [vmem:[%s986_s1 + $0xd0] sm:$0xff]  }
  0x12   : > { %739 = vmatprep.subr.bf16.mxu0 %v795_v8  ;;  %v802_v15 = vld [vmem:[%s986_s1 + $0xa0] sm:$0xff]   ;;  %v806_v19 = vld [vmem:[%s986_s1 + $0x98] sm:$0xff]   ;;  %v810_v23 = vld [vmem:[%s986_s1 + $0x90] sm:$0xff]  }
  0x13   : > { %760 = vmatpush3.bf16.msra.mxu1 %v794_v7  ;;  %v811_v24 = vld [vmem:[%s986_s1 + $0x48] sm:$0xff]   ;;  %v815_v28 = vld [vmem:[%s986_s1 + $0x40] sm:$0xff]  }
  0x14   : > { %761 = vmatprep.subr.bf16.mxu1 %v797_v10  ;;  %v812_v25 = vld [vmem:[%s986_s1 + $0x8] sm:$0xff]   ;;  %v816_v29 = vld [vmem:[%s986_s1] sm:$0xff]  }
  0x15   : > { %740 = vmatpush3.bf16.msra.mxu0 %v796_v9  ;;  %v813_v26 = vld [vmem:[%s986_s1 + $0xc8] sm:$0xff]   ;;  %v817_v30 = vld [vmem:[%s986_s1 + $0xc0] sm:$0xff]   ;;  %v585_v9 = vlaneseq }
  0x16   : > { %741 = vmatprep.subr.bf16.mxu0 %v799_v12  ;;  %v814_v27 = vld [vmem:[%s986_s1 + $0x88] sm:$0xff]   ;;  %v197_v31 = vld [vmem:[%s191_s30] sm:$0x33] }
  0x17   : > { %762 = vmatpush3.bf16.msra.mxu1 %v798_v11  ;;  %v664_v32 = vcombine.low %v197_v31, %v197_v31  ;;  %v665_v33 = vcombine.high %v197_v31, %v197_v31  ;;  %v820_v34 = vld [vmem:[%s986_s1 + $0x80] sm:$0xff]   ;;  %v586_v10 = vshrl.u32 %v585_v9, 7 }
  0x18   : > { %763 = vmatprep.subr.bf16.mxu1 %v801_v14  ;;  %v374_v35 = vld [vmem:[%s191_s30] sm:$0x66]  ;;  %v577_v11 = vld [vmem:[%s987_s2] sm:$0x1] }
  0x19   : > { %742 = vmatpush3.bf16.msra.mxu0 %v800_v13  ;;  %v714_v36 = vcombine.low %v374_v35, %v374_v35  ;;  %v715_v37 = vcombine.high %v374_v35, %v374_v35  ;;  %365 = vmatprep.mubr.bf16.mxu0 %v665_v33  ;;  %v587_v12 = vsub.s32 0, %v586_v10 }
  0x1a   : > { %743 = vmatprep.subr.bf16.mxu0 %v803_v16 }
  0x1b   : > { %764 = vmatpush3.bf16.msra.mxu1 %v802_v15  ;;  %v413_v38 = vrot.slane %v714_v36, 1  ;;  %v414_v39 = vrot.slane %v715_v37, 1  ;;  %v581_v15 = vld [vmem:[%s988_s3] sm:$0x1] }
  0x1c   : > { %765 = vmatprep.subr.bf16.mxu1 %v805_v18 }
  0x1d   : > { %744 = vmatpush3.bf16.msra.mxu0 %v804_v17  ;;  %545 = vmatprep.mubr.bf16.mxu1 %v414_v39 }
  0x1e   : > { %745 = vmatprep.subr.bf16.mxu0 %v807_v20 }
  0x1f   : > { %766 = vmatpush3.bf16.msra.mxu1 %v806_v19 }
  0x20   : > { %767 = vmatprep.subr.bf16.mxu1 %v809_v22 }
  0x21   : > { %746 = vmatpush3.bf16.msra.mxu0 %v808_v21 }
  0x22   : > { %747 = vmatprep.subr.bf16.mxu0 %v811_v24 }
  0x23   : > { %768 = vmatpush3.bf16.msra.mxu1 %v810_v23 }
  0x24   : > { %769 = vmatprep.subr.bf16.mxu1 %v813_v26 }
  0x25   : > { %748 = vmatpush3.bf16.msra.mxu0 %v812_v25 }
  0x26   : > { %749 = vmatprep.subr.bf16.mxu0 %v815_v28 }
  0x27   : > { %770 = vmatpush3.bf16.msra.mxu1 %v814_v27 }
  0x28   : > { %771 = vmatprep.subr.bf16.mxu1 %v817_v30 }
  0x29   : > { %750 = vmatpush3.bf16.msra.mxu0 %v816_v29 }
  0x2b   : > { %772 = vmatpush3.bf16.msra.mxu1 %v820_v34 }
  0x2c   : > { %366 = vmatmul.mubr.bf16.vlgmr.msra.gmra.mxu0 %v664_v32 }
  0x2e   : > { %546 = vmatmul.mubr.bf16.vlgmr.msra.gmra.mxu1 %v413_v38 }
  0xec   : > { %v751_v40 = vpop.f32.mrf.mxu0 }
  0xee   : > { %v752_v41 = vpop.f32.mrf.mxu0  ;;  %v773_v43 = vpop.f32.mrf.mxu1 }
  0xef   : > { %v753_v42 = vadd.f32 %v752_v41, %v751_v40 }
  0xf0   : > { %v754_v44 = vpop.f32.mrf.mxu0  ;;  %v774_v45 = vpop.f32.mrf.mxu1 }
  0xf1   : > { %373 = vst [vmem:[#allocation2] sm:$0xf] %v753_v42  ;;  %v775_v49 = vadd.f32 %v774_v45, %v773_v43 }
  0xf2   : > { %v755_v46 = vpop.f32.mrf.mxu0  ;;  %v776_v47 = vpop.f32.mrf.mxu1 }
  0xf4   : > { %v777_v48 = vpop.f32.mrf.mxu1 }
  0xf8   : > { %v553_v50 = vld [vmem:[#allocation2] sm:$0xf] }
  0xf9   : > { %v554_v51 = vadd.f32 %v775_v49, %v553_v50 }
  0xfb   : > { %555 = vst [vmem:[#allocation2] sm:$0xf] %v554_v51 }
 0x102   : > { %v556_v52 = vld [vmem:[#allocation2] sm:$0xf] }
 0x103   : > { %v558_v53 = vsel %vm557_vm0, %v556_v52, 0.0  ;;  %v565_v54 = vmul.f32 %v556_v52, %v556_v52 }
 0x104   : > { %v559_v55 = vrot.slane %v558_v53, 4 }
 0x105   : > { %v566_v56 = vsel %vm557_vm0, %v565_v54, 0.0 }
 0x106   : > { %v560_v57 = vadd.f32 %v559_v55, %v558_v53  ;;  %v567_v58 = vrot.slane %v566_v56, 4 }
 0x108   : > { %v561_v59 = vrot.slane %v560_v57, 2  ;;  %v568_v60 = vadd.f32 %v567_v58, %v566_v56 }
 0x10a   : > { %v562_v61 = vadd.f32 %v561_v59, %v560_v57  ;;  %v569_v62 = vrot.slane %v568_v60, 2 }
 0x10c   : > { %v563_v63 = vrot.slane %v562_v61, 1  ;;  %v570_v0 = vadd.f32 %v569_v62, %v568_v60 }
 0x10e   : > { %v564_v1 = vadd.f32 %v563_v63, %v562_v61  ;;  %v571_v2 = vrot.slane %v570_v0, 1 }
 0x110   : > { %v572_v3 = vadd.f32 %v571_v2, %v570_v0  ;;  %v573_v4 = vmul.f32 0.25, %v564_v1 }
 0x112   : > { %v574_v5 = vmul.f32 0.25, %v572_v3  ;;  %v575_v6 = vmul.f32 %v573_v4, %v573_v4 }
 0x114   : > { %v576_v7 = vsub.f32 %v574_v5, %v575_v6 }
 0x116   : > { %v578_v8 = vadd.f32 1e-05, %v576_v7 }
 0x118   : > { %823 = vrsqrt.f32 %v578_v8 }
 0x125   : > { %v824_v13 = vpop.eup %823 }
 0x126   : > { %v580_v14 = vmul.f32 %v824_v13, %v577_v11 }
 0x128   : > { %v582_v16 = vmul.f32 %v580_v14, %v573_v4  ;;  %v588_v17 = vrot.slane %v580_v14, %v587_v12 }
 0x12a   : > { %v583_v18 = vsub.f32 %v581_v15, %v582_v16  ;;  %v590_v19 = vmul.f32 %v588_v17, %v556_v52 }
 0x12c   : > { %v595_v20 = vrot.slane %v583_v18, %v587_v12 }
 0x12e   : > { %v597_v21 = vadd.f32 %v595_v20, %v590_v19 }
 0x130   : > { %vm598_vm1 = vcmp.gt.f32.partialorder %v597_v21, 0.0  ;;  %v599_v22 = vmul.f32 0.01, %v597_v21 }
 0x132   : > { %v600_v23 = vsel %vm598_vm1, %v597_v21, %v599_v22 }
 0x133   : > { %v601_v24 = vpack.c.bf16 %v600_v23, %v600_v23 }
 0x135   : > { %602 = vst [vmem:[%s195_s20] sm:$0x3] %v601_v24 }
 0x136 PF: > { %s14_s15 = sadd.s32 1, %s831_s15  }
 0x137   : > { %p11_p4 = scmp.ge.s32.totalorder %s14_s15, 4  }
 0x139   :  { %13 = sbr.rel (!%p11_p4) target bundleno = 1 (0x1), region = 67 }

</bundles_post_ra>
